<compile_context>
chip_gen: v7x
topology: tpu7x:2x2x1
jax: 0.10.0
libtpu: 0.0.40
codegen_flags: <defaults>
</compile_context>

<pallas_src>
import functools
import math

import jax
import jax.numpy as jnp
from jax.experimental import pallas as pl
from jax.experimental.pallas import tpu as pltpu

LN_EPS = 1e-12            # BERT LayerNorm eps
PAD_OUT = 128             # lane-dense padded logits width (real logits live in [:, :2])
FFN_CHUNK_TARGET = 512    # max rows per FFN chunk (caps the (chunk, I) GELU intermediate)


def _layernorm(x, g, b):
    mu = jnp.mean(x, axis=-1, keepdims=True)
    var = jnp.mean(jnp.square(x - mu), axis=-1, keepdims=True)
    return (x - mu) * jax.lax.rsqrt(var + LN_EPS) * g + b


def _gelu(x):
    # exact (erf-based) GELU, matching HF BERT's "gelu"
    return 0.5 * x * (1.0 + jax.lax.erf(x * (1.0 / math.sqrt(2.0))))


def _pick_ffn_chunk(tokens, target=FFN_CHUNK_TARGET):
    if tokens <= target:
        return tokens
    for c in range(target, 7, -8):            # largest divisor of `tokens` <= target
        if tokens % c == 0:
            return c
    return tokens


# ----------------------------------------------------------------------------- kernel

def fused_bert_kernel(x_hbm, mask_ref, eg_ref, eb_ref,
                      wqkv_ref, bqkv_ref, wo_ref, bo_ref, g1_ref, b1_ref,
                      w1_ref, fb1_ref, w2_ref, fb2_ref, g2_ref, b2_ref,
                      wp_ref, bp_ref, wf_ref, bf_ref,
                      out_ref, act_ref, dma_sem,
                      *, num_heads, batch_tile, seq, ffn_chunk):
    bt_idx = pl.program_id(0)                 # batch-tile index ("parallel" axis)
    layer = pl.program_id(1)                  # layer index ("arbitrary" axis)
    num_layers = pl.num_programs(1)
    tokens = batch_tile * seq                 # rows in this batch tile
    hidden = act_ref.shape[-1]
    head_dim = hidden // num_heads

    # ---- layer 0: DMA this tile's embeddings HBM->VMEM, then embedding LayerNorm ----
    @pl.when(layer == 0)
    def _():
        row0 = bt_idx * tokens
        cp = pltpu.make_async_copy(x_hbm.at[pl.ds(row0, tokens)], act_ref, dma_sem)
        cp.start()
        cp.wait()
        act_ref[...] = _layernorm(act_ref[...], eg_ref[...], eb_ref[...])

    x = act_ref[...]                          # (tokens, H) f32, resident across layers
    xb = x.astype(jnp.bfloat16)
    mask = mask_ref[...]                      # (bt, 1, S) additive key-axis mask (f32)

    # ---- fused QKV projection: one (H, 3H) MXU matmul ----
    qkv = (jnp.dot(xb, wqkv_ref[...], preferred_element_type=jnp.float32)
           + bqkv_ref[...])                   # (tokens, 3H); cols = [Q heads | K heads | V heads]

    # ---- per-head attention, deferred softmax normalization ----
    ctx_parts = []
    for h in range(num_heads):                # static unroll over heads
        lo = h * head_dim
        qh = qkv[:, lo:lo + head_dim].reshape(batch_tile, seq, head_dim).astype(jnp.bfloat16)
        kh = qkv[:, hidden + lo:hidden + lo + head_dim] \
            .reshape(batch_tile, seq, head_dim).astype(jnp.bfloat16)
        vh = qkv[:, 2 * hidden + lo:2 * hidden + lo + head_dim] \
            .reshape(batch_tile, seq, head_dim).astype(jnp.bfloat16)

        s = jnp.einsum('bqd,bkd->bqk', qh, kh, preferred_element_type=jnp.float32)
        s = s + mask                                          # (bt,S,S) + (bt,1,S)
        s = s - jnp.max(s, axis=-1, keepdims=True)
        p = jnp.exp(s)
        l = jnp.sum(p, axis=-1, keepdims=True)                # (bt,S,1)
        ctx = jnp.einsum('bqk,bkd->bqd', p.astype(jnp.bfloat16), vh,
                         preferred_element_type=jnp.float32)  # unnormalized P@V
        ctx = ctx * pl.reciprocal(l, approx=True)             # EUP divide, (bt,S,hd) work
        ctx_parts.append(ctx.reshape(tokens, head_dim).astype(jnp.bfloat16))

    ctx = jnp.concatenate(ctx_parts, axis=-1)                 # (tokens, H) bf16, head-major

    # ---- fused output projection: one (H, H) MXU matmul ----
    attn = jnp.dot(ctx, wo_ref[...], preferred_element_type=jnp.float32) + bo_ref[...]
    h1 = _layernorm(x + attn, g1_ref[...], b1_ref[...])       # (tokens, H) f32

    # ---- feed-forward, chunked over tokens (caps the (chunk, I) intermediate) ----
    n_chunks = tokens // ffn_chunk
    for c in range(n_chunks):                 # static unroll; ffn_chunk divides tokens
        hc = h1[c * ffn_chunk:(c + 1) * ffn_chunk]
        ff = _gelu(jnp.dot(hc.astype(jnp.bfloat16), w1_ref[...],
                           preferred_element_type=jnp.float32) + fb1_ref[...])
        ff = jnp.dot(ff.astype(jnp.bfloat16), w2_ref[...],
                     preferred_element_type=jnp.float32) + fb2_ref[...]
        act_ref[pl.ds(c * ffn_chunk, ffn_chunk), :] = \
            _layernorm(hc + ff, g2_ref[...], b2_ref[...])

    # ---- last layer: CLS rows via strided read, fused pooler (tanh) + classifier ----
    @pl.when(layer == num_layers - 1)
    def _():
        cls = act_ref[pl.ds(0, batch_tile, stride=seq), :]    # (bt, H) CLS token rows
        pooled = jnp.tanh(jnp.dot(cls.astype(jnp.bfloat16), wp_ref[...],
                                  preferred_element_type=jnp.float32) + bp_ref[...])
        out_ref[...] = (jnp.dot(pooled.astype(jnp.bfloat16), wf_ref[...],
                                preferred_element_type=jnp.float32) + bf_ref[...])


# ----------------------------------------------------------------------------- wrapper

def bert_encoder_fused(emb2d, mask_bias, p, *, num_heads, batch_tile=None):
    T, H = emb2d.shape
    B, _, S = mask_bias.shape
    L = p["wqkv"].shape[0]
    I = p["w1"].shape[-1]

    if batch_tile is None:
        batch_tile = B                         # v7x: set batch_tile = B // 2 to use both TCs
    assert B % batch_tile == 0
    n_bt = B // batch_tile
    tile_tokens = batch_tile * S
    ffn_chunk = _pick_ffn_chunk(tile_tokens)

    def inv(shape):                            # invariant (same block every grid step)
        n = len(shape)
        return pl.BlockSpec(shape, lambda b, l, n=n: (0,) * n)

    def per_layer(shape_wo_l):                 # stacked along leading L axis, squeezed
        n = len(shape_wo_l)
        return pl.BlockSpec((None,) + tuple(shape_wo_l),
                            lambda b, l, n=n: (l,) + (0,) * n)

    in_specs = [
        pl.BlockSpec(memory_space=pl.ANY),                 # summed embeddings stay in HBM
        pl.BlockSpec((batch_tile, 1, S), lambda b, l: (b, 0, 0)),   # additive attention mask
        inv((1, H)), inv((1, H)),                          # embedding LN gamma/beta
        per_layer((H, 3 * H)), per_layer((1, 3 * H)),      # fused QKV weight / bias
        per_layer((H, H)), per_layer((1, H)),              # output projection
        per_layer((1, H)), per_layer((1, H)),              # ln1 gamma/beta
        per_layer((H, I)), per_layer((1, I)),              # FFN in
        per_layer((I, H)), per_layer((1, H)),              # FFN out
        per_layer((1, H)), per_layer((1, H)),              # ln2 gamma/beta
        inv((H, H)), inv((1, H)),                          # pooler w/b
        inv((H, PAD_OUT)), inv((1, PAD_OUT)),              # classifier w/b (lane-padded)
    ]

    kernel = functools.partial(fused_bert_kernel, num_heads=num_heads,
                               batch_tile=batch_tile, seq=S, ffn_chunk=ffn_chunk)

    return pl.pallas_call(
        kernel,
        out_shape=jax.ShapeDtypeStruct((B, PAD_OUT), jnp.float32),
        grid=(n_bt, L),
        in_specs=in_specs,
        out_specs=pl.BlockSpec((batch_tile, PAD_OUT), lambda b, l: (b, 0)),
        scratch_shapes=[pltpu.VMEM((tile_tokens, H), jnp.float32),   # resident activation
                        pltpu.SemaphoreType.DMA(())],                # embedding DMA sem
        compiler_params=pltpu.CompilerParams(
            dimension_semantics=("parallel", "arbitrary"),
            # TODO(synk): re-derive per generation at real BERT-base sizes
            # (leave headroom under v7x's 64 MiB physical VMEM).
            vmem_limit_bytes=64 * 1024 * 1024),
    )(emb2d, mask_bias, p["emb_ln_g"], p["emb_ln_b"],
      p["wqkv"], p["bqkv"], p["wo"], p["bo"], p["ln1_g"], p["ln1_b"],
      p["w1"], p["b1"], p["w2"], p["b2"], p["ln2_g"], p["ln2_b"],
      p["pooler_w"], p["pooler_b"], p["fc_w"], p["fc_b"])


def pack_params(params, *, num_heads):
    """One-time parameter transform (call ONCE, outside the forward pass):
    stack per-layer weights along L, concatenate Q/K/V into one (H,3H) matrix,
    fold 1/sqrt(head_dim) into Wq/bq, cast weight matrices to bf16, pad the
    classifier to a lane-dense 128-wide output."""
    H = params["pooler_w"].shape[0]
    hd = H // num_heads
    scale = 1.0 / math.sqrt(hd)
    layers = params["layers"]
    bf16 = jnp.bfloat16

    def stack(fn):
        return jnp.stack([fn(lp) for lp in layers])

    return dict(
        # embedding tables (used by the JAX-side gather glue)
        word_emb=params["word_emb"], pos_emb=params["pos_emb"], type_emb=params["type_emb"],
        emb_ln_g=params["emb_ln_g"], emb_ln_b=params["emb_ln_b"],
        # fused QKV: columns = [Q (head-major) | K | V], scale folded into Q
        wqkv=stack(lambda lp: jnp.concatenate(
            [lp["wq"] * scale, lp["wk"], lp["wv"]], axis=1)).astype(bf16),
        bqkv=stack(lambda lp: jnp.concatenate(
            [lp["bq"] * scale, lp["bk"], lp["bv"]], axis=1)),
        wo=stack(lambda lp: lp["wo"]).astype(bf16),
        bo=stack(lambda lp: lp["bo"]),
        ln1_g=stack(lambda lp: lp["ln1_g"]), ln1_b=stack(lambda lp: lp["ln1_b"]),
        w1=stack(lambda lp: lp["w1"]).astype(bf16), b1=stack(lambda lp: lp["b1"]),
        w2=stack(lambda lp: lp["w2"]).astype(bf16), b2=stack(lambda lp: lp["b2"]),
        ln2_g=stack(lambda lp: lp["ln2_g"]), ln2_b=stack(lambda lp: lp["ln2_b"]),
        pooler_w=params["pooler_w"].astype(bf16), pooler_b=params["pooler_b"],
        fc_w=jnp.zeros((H, PAD_OUT), jnp.float32).at[:, :2].set(params["fc_w"]).astype(bf16),
        fc_b=jnp.zeros((1, PAD_OUT), jnp.float32).at[:, :2].set(params["fc_b"]),
    )


def fake_news_classifier_forward(packed, input_ids, attention_mask, *,
                                 num_heads, batch_tile=None):
    B, S = input_ids.shape
    H = packed["word_emb"].shape[1]

    # glue: embedding gathers (word + position + token-type) stay in plain JAX
    # (token_type_ids hard-coded to 0, i.e. single-segment classification)
    emb = (packed["word_emb"][input_ids]
           + packed["pos_emb"][:S][None, :, :]
           + packed["type_emb"][0][None, None, :])
    emb2d = emb.reshape(B * S, H).astype(jnp.float32)

    # BERT extended attention mask: 0 -> large negative bias on the key axis
    mask_bias = ((1.0 - attention_mask.astype(jnp.float32)) * -1e9)[:, None, :]  # (B,1,S)

    logits_padded = bert_encoder_fused(emb2d, mask_bias, packed,
                                       num_heads=num_heads, batch_tile=batch_tile)
    return logits_padded[:, :2]


# ----------------------------------------------------------------------------- params

def init_params(key, *, vocab, max_pos, type_vocab, H, I, num_layers):
    ks = iter(jax.random.split(key, 16 + 12 * num_layers))

    def nrm(shape):
        return (0.02 * jax.random.normal(next(ks), shape)).astype(jnp.float32)

    params = dict(
        word_emb=nrm((vocab, H)),
        pos_emb=nrm((max_pos, H)),
        type_emb=nrm((type_vocab, H)),
        emb_ln_g=jnp.ones((1, H), jnp.float32),
        emb_ln_b=jnp.zeros((1, H), jnp.float32),
        pooler_w=nrm((H, H)),
        pooler_b=jnp.zeros((1, H), jnp.float32),
        fc_w=nrm((H, 2)),
        fc_b=jnp.zeros((1, 2), jnp.float32),
        layers=[],
    )
    for _ in range(num_layers):
        params["layers"].append(dict(
            wq=nrm((H, H)), bq=jnp.zeros((1, H), jnp.float32),
            wk=nrm((H, H)), bk=jnp.zeros((1, H), jnp.float32),
            wv=nrm((H, H)), bv=jnp.zeros((1, H), jnp.float32),
            wo=nrm((H, H)), bo=jnp.zeros((1, H), jnp.float32),
            ln1_g=jnp.ones((1, H), jnp.float32), ln1_b=jnp.zeros((1, H), jnp.float32),
            w1=nrm((H, I)), b1=jnp.zeros((1, I), jnp.float32),
            w2=nrm((I, H)), b2=jnp.zeros((1, H), jnp.float32),
            ln2_g=jnp.ones((1, H), jnp.float32), ln2_b=jnp.zeros((1, H), jnp.float32),
        ))
    return params


if __name__ == "__main__":
    # small BERT-like config
    B, S, H, I = 2, 8, 32, 64
    NUM_HEADS, NUM_LAYERS = 2, 2
    VOCAB, MAX_POS, TYPE_VOCAB = 100, 16, 2

    key = jax.random.PRNGKey(0)
    k_par, k_ids = jax.random.split(key)
    params = init_params(k_par, vocab=VOCAB, max_pos=MAX_POS, type_vocab=TYPE_VOCAB,
                         H=H, I=I, num_layers=NUM_LAYERS)

    # one-time parameter packing (hoisted out of the forward pass)
    packed = pack_params(params, num_heads=NUM_HEADS)

    input_ids = jax.random.randint(k_ids, (B, S), 0, VOCAB, dtype=jnp.int32)
    attention_mask = jnp.ones((B, S), dtype=jnp.int32).at[1, 6:].set(0)  # pad tail of row 1

    fwd = jax.jit(functools.partial(fake_news_classifier_forward, num_heads=NUM_HEADS))
    logits = fwd(packed, input_ids, attention_mask)
    logits = jax.block_until_ready(logits)

    assert logits.shape == (B, 2) and logits.dtype == jnp.float32
    assert bool(jnp.all(jnp.isfinite(logits)))
    print("KERNEL_OK")
</pallas_src>

<mosaic_0001>
module attributes {stable_mosaic.version = 11 : i64} {
  func.func @fused_bert_kernel(%arg0: i32, %arg1: i32, %arg2: memref<16x32xf32, #tpu.memory_space<any>>, %arg3: memref<2x1x8xf32, #tpu.memory_space<vmem>>, %arg4: memref<1x32xf32, #tpu.memory_space<vmem>>, %arg5: memref<1x32xf32, #tpu.memory_space<vmem>>, %arg6: memref<1x32x96xbf16, #tpu.memory_space<vmem>>, %arg7: memref<1x1x96xf32, #tpu.memory_space<vmem>>, %arg8: memref<1x32x32xbf16, #tpu.memory_space<vmem>>, %arg9: memref<1x1x32xf32, #tpu.memory_space<vmem>>, %arg10: memref<1x1x32xf32, #tpu.memory_space<vmem>>, %arg11: memref<1x1x32xf32, #tpu.memory_space<vmem>>, %arg12: memref<1x32x64xbf16, #tpu.memory_space<vmem>>, %arg13: memref<1x1x64xf32, #tpu.memory_space<vmem>>, %arg14: memref<1x64x32xbf16, #tpu.memory_space<vmem>>, %arg15: memref<1x1x32xf32, #tpu.memory_space<vmem>>, %arg16: memref<1x1x32xf32, #tpu.memory_space<vmem>>, %arg17: memref<1x1x32xf32, #tpu.memory_space<vmem>>, %arg18: memref<32x32xbf16, #tpu.memory_space<vmem>>, %arg19: memref<1x32xf32, #tpu.memory_space<vmem>>, %arg20: memref<32x128xbf16, #tpu.memory_space<vmem>>, %arg21: memref<1x128xf32, #tpu.memory_space<vmem>>, %arg22: memref<2x128xf32, #tpu.memory_space<vmem>>, %arg23: memref<16x32xf32, #tpu.memory_space<vmem>>, %arg24: memref<!tpu.dma_semaphore, #tpu.memory_space<semaphore_mem>>) attributes {dimension_semantics = [#tpu.dimension_semantics<parallel>, #tpu.dimension_semantics<arbitrary>], iteration_bounds = array<i64: 1, 2>, scalar_prefetch = 0 : i64, scratch_operands = 2 : i64, tpu.core_type = #tpu.core_type<tc>, window_params = [{}, {transform_indices = @transform_1, window_bounds = array<i64: 2, 1, 8>}, {pipeline_mode = #tpu.pipeline_mode<synchronous>, transform_indices = @transform_2, window_bounds = array<i64: 1, 32>}, {pipeline_mode = #tpu.pipeline_mode<synchronous>, transform_indices = @transform_3, window_bounds = array<i64: 1, 32>}, {transform_indices = @transform_4, window_bounds = array<i64: 1, 32, 96>}, {transform_indices = @transform_5, window_bounds = array<i64: 1, 1, 96>}, {transform_indices = @transform_6, window_bounds = array<i64: 1, 32, 32>}, {transform_indices = @transform_7, window_bounds = array<i64: 1, 1, 32>}, {transform_indices = @transform_8, window_bounds = array<i64: 1, 1, 32>}, {transform_indices = @transform_9, window_bounds = array<i64: 1, 1, 32>}, {transform_indices = @transform_10, window_bounds = array<i64: 1, 32, 64>}, {transform_indices = @transform_11, window_bounds = array<i64: 1, 1, 64>}, {transform_indices = @transform_12, window_bounds = array<i64: 1, 64, 32>}, {transform_indices = @transform_13, window_bounds = array<i64: 1, 1, 32>}, {transform_indices = @transform_14, window_bounds = array<i64: 1, 1, 32>}, {transform_indices = @transform_15, window_bounds = array<i64: 1, 1, 32>}, {pipeline_mode = #tpu.pipeline_mode<synchronous>, transform_indices = @transform_16, window_bounds = array<i64: 32, 32>}, {pipeline_mode = #tpu.pipeline_mode<synchronous>, transform_indices = @transform_17, window_bounds = array<i64: 1, 32>}, {pipeline_mode = #tpu.pipeline_mode<synchronous>, transform_indices = @transform_18, window_bounds = array<i64: 32, 128>}, {pipeline_mode = #tpu.pipeline_mode<synchronous>, transform_indices = @transform_19, window_bounds = array<i64: 1, 128>}, {transform_indices = @transform_20, window_bounds = array<i64: 2, 128>}]} {
    %c0_i32 = arith.constant 0 : i32
    %0 = arith.cmpi eq, %arg1, %c0_i32 : i32
    %1 = arith.extui %0 : i1 to i32
    %c0_i32_0 = arith.constant 0 : i32
    %2 = arith.cmpi ne, %1, %c0_i32_0 : i32
    scf.if %2 {
      %c16_i32 = arith.constant 16 : i32
      %155 = arith.muli %arg0, %c16_i32 : i32
      %c0_i32_68 = arith.constant 0 : i32
      %156 = tpu.memref_slice %arg2[%155, %c0_i32_68] : memref<16x32xf32, #tpu.memory_space<any>> -> memref<16x32xf32, #tpu.memory_space<any>>
      tpu.enqueue_dma source(%156 : memref<16x32xf32, #tpu.memory_space<any>>) target(%arg23 : memref<16x32xf32, #tpu.memory_space<vmem>>) target_semaphore(%arg24 : memref<!tpu.dma_semaphore, #tpu.memory_space<semaphore_mem>>)
      %c0_i32_69 = arith.constant 0 : i32
      %157 = tpu.memref_slice %arg2[%155, %c0_i32_69] : memref<16x32xf32, #tpu.memory_space<any>> -> memref<16x32xf32, #tpu.memory_space<any>>
      tpu.wait_dma2 semaphore(%arg24 : memref<!tpu.dma_semaphore, #tpu.memory_space<semaphore_mem>>) src(%157 : memref<16x32xf32, #tpu.memory_space<any>>) dst(%arg23 : memref<16x32xf32, #tpu.memory_space<vmem>>)
      %c0_70 = arith.constant 0 : index
      %c0_71 = arith.constant 0 : index
      %158 = vector.load %arg23[%c0_70, %c0_71] : memref<16x32xf32, #tpu.memory_space<vmem>>, vector<16x32xf32>
      %c0_72 = arith.constant 0 : index
      %c0_73 = arith.constant 0 : index
      %159 = vector.load %arg4[%c0_72, %c0_73] : memref<1x32xf32, #tpu.memory_space<vmem>>, vector<1x32xf32>
      %c0_74 = arith.constant 0 : index
      %c0_75 = arith.constant 0 : index
      %160 = vector.load %arg5[%c0_74, %c0_75] : memref<1x32xf32, #tpu.memory_space<vmem>>, vector<1x32xf32>
      %cst_76 = arith.constant dense<0.000000e+00> : vector<16xf32>
      %161 = vector.multi_reduction <add>, %158, %cst_76 [1] : vector<16x32xf32> to vector<16xf32>
      %162 = vector.shape_cast %161 : vector<16xf32> to vector<16x1xf32>
      %cst_77 = arith.constant 3.200000e+01 : f32
      %163 = vector.broadcast %cst_77 : f32 to vector<16x1xf32>
      %164 = arith.divf %162, %163 : vector<16x1xf32>
      %165 = vector.broadcast %164 : vector<16x1xf32> to vector<16x32xf32>
      %166 = arith.subf %158, %165 : vector<16x32xf32>
      %167 = arith.mulf %166, %166 : vector<16x32xf32>
      %cst_78 = arith.constant dense<0.000000e+00> : vector<16xf32>
      %168 = vector.multi_reduction <add>, %167, %cst_78 [1] : vector<16x32xf32> to vector<16xf32>
      %169 = vector.shape_cast %168 : vector<16xf32> to vector<16x1xf32>
      %cst_79 = arith.constant 3.200000e+01 : f32
      %170 = vector.broadcast %cst_79 : f32 to vector<16x1xf32>
      %171 = arith.divf %169, %170 : vector<16x1xf32>
      %172 = vector.broadcast %164 : vector<16x1xf32> to vector<16x32xf32>
      %173 = arith.subf %158, %172 : vector<16x32xf32>
      %cst_80 = arith.constant 9.99999996E-13 : f32
      %174 = vector.broadcast %cst_80 : f32 to vector<16x1xf32>
      %175 = arith.addf %171, %174 : vector<16x1xf32>
      %176 = math.rsqrt %175 : vector<16x1xf32>
      %177 = vector.broadcast %176 : vector<16x1xf32> to vector<16x32xf32>
      %178 = arith.mulf %173, %177 : vector<16x32xf32>
      %179 = vector.broadcast %159 : vector<1x32xf32> to vector<16x32xf32>
      %180 = arith.mulf %178, %179 : vector<16x32xf32>
      %181 = vector.broadcast %160 : vector<1x32xf32> to vector<16x32xf32>
      %182 = arith.addf %180, %181 : vector<16x32xf32>
      %c0_81 = arith.constant 0 : index
      %c0_82 = arith.constant 0 : index
      %183 = vector.load %arg23[%c0_81, %c0_82] : memref<16x32xf32, #tpu.memory_space<vmem>>, vector<16x32xf32>
      tpu.vector_store %arg23[%c0_81, %c0_82], %182 {strides = array<i32>} : memref<16x32xf32, #tpu.memory_space<vmem>>, vector<16x32xf32>,
    } else {
    }
    %c0 = arith.constant 0 : index
    %c0_1 = arith.constant 0 : index
    %3 = vector.load %arg23[%c0, %c0_1] : memref<16x32xf32, #tpu.memory_space<vmem>>, vector<16x32xf32>
    %4 = arith.truncf %3 : vector<16x32xf32> to vector<16x32xbf16>
    %c0_2 = arith.constant 0 : index
    %c0_3 = arith.constant 0 : index
    %c0_4 = arith.constant 0 : index
    %5 = vector.load %arg3[%c0_2, %c0_3, %c0_4] : memref<2x1x8xf32, #tpu.memory_space<vmem>>, vector<2x1x8xf32>
    %c0_5 = arith.constant 0 : index
    %c0_6 = arith.constant 0 : index
    %c0_7 = arith.constant 0 : index
    %6 = vector.load %arg6[%c0_5, %c0_6, %c0_7] : memref<1x32x96xbf16, #tpu.memory_space<vmem>>, vector<1x32x96xbf16>
    %7 = vector.shape_cast %6 : vector<1x32x96xbf16> to vector<32x96xbf16>
    %cst = arith.constant dense<0.000000e+00> : vector<16x96xf32>
    %8 = tpu.matmul %4, %7, %cst {dimension_numbers = #tpu.dot_dimension_numbers<[1], [0], [0], [1], [0, 0, 1, 1], [], []>} : vector<16x32xbf16>, vector<32x96xbf16>, vector<16x96xf32> -> vector<16x96xf32>
    %c0_8 = arith.constant 0 : index
    %c0_9 = arith.constant 0 : index
    %c0_10 = arith.constant 0 : index
    %9 = vector.load %arg7[%c0_8, %c0_9, %c0_10] : memref<1x1x96xf32, #tpu.memory_space<vmem>>, vector<1x1x96xf32>
    %10 = vector.shape_cast %9 : vector<1x1x96xf32> to vector<1x96xf32>
    %11 = vector.broadcast %10 : vector<1x96xf32> to vector<16x96xf32>
    %12 = arith.addf %8, %11 : vector<16x96xf32>
    %13 = vector.extract_strided_slice %12 {offsets = [0, 0], sizes = [16, 16], strides = [1, 1]} : vector<16x96xf32> to vector<16x16xf32>
    %14 = vector.shape_cast %13 : vector<16x16xf32> to vector<2x8x16xf32>
    %15 = arith.truncf %14 : vector<2x8x16xf32> to vector<2x8x16xbf16>
    %16 = vector.extract_strided_slice %12 {offsets = [0, 32], sizes = [16, 16], strides = [1, 1]} : vector<16x96xf32> to vector<16x16xf32>
    %17 = vector.shape_cast %16 : vector<16x16xf32> to vector<2x8x16xf32>
    %18 = arith.truncf %17 : vector<2x8x16xf32> to vector<2x8x16xbf16>
    %19 = vector.extract_strided_slice %12 {offsets = [0, 64], sizes = [16, 16], strides = [1, 1]} : vector<16x96xf32> to vector<16x16xf32>
    %20 = vector.shape_cast %19 : vector<16x16xf32> to vector<2x8x16xf32>
    %21 = arith.truncf %20 : vector<2x8x16xf32> to vector<2x8x16xbf16>
    "tpu.trace_start"() <{level = 10 : i32, message = "bqd,bkd->bqk"}> : () -> ()
    %cst_11 = arith.constant dense<0.000000e+00> : vector<2x8x8xf32>
    %22 = tpu.matmul %15, %18, %cst_11 {dimension_numbers = #tpu.dot_dimension_numbers<[2], [2], [1], [1], [0, 0, 0, 1, 1, 1], [0], [0]>} : vector<2x8x16xbf16>, vector<2x8x16xbf16>, vector<2x8x8xf32> -> vector<2x8x8xf32>
    "tpu.trace_stop"() : () -> ()
    %23 = vector.broadcast %5 : vector<2x1x8xf32> to vector<2x8x8xf32>
    %24 = arith.addf %22, %23 : vector<2x8x8xf32>
    %cst_12 = arith.constant dense<0xFF800000> : vector<2x8xf32>
    %25 = vector.multi_reduction <maximumf>, %24, %cst_12 [2] : vector<2x8x8xf32> to vector<2x8xf32>
    %26 = vector.shape_cast %25 : vector<2x8xf32> to vector<2x8x1xf32>
    %27 = vector.broadcast %26 : vector<2x8x1xf32> to vector<2x8x8xf32>
    %28 = arith.subf %24, %27 : vector<2x8x8xf32>
    %29 = math.exp %28 : vector<2x8x8xf32>
    %cst_13 = arith.constant dense<0.000000e+00> : vector<2x8xf32>
    %30 = vector.multi_reduction <add>, %29, %cst_13 [2] : vector<2x8x8xf32> to vector<2x8xf32>
    %31 = vector.shape_cast %30 : vector<2x8xf32> to vector<2x8x1xf32>
    %32 = arith.truncf %29 : vector<2x8x8xf32> to vector<2x8x8xbf16>
    "tpu.trace_start"() <{level = 10 : i32, message = "bqk,bkd->bqd"}> : () -> ()
    %cst_14 = arith.constant dense<0.000000e+00> : vector<2x8x16xf32>
    %33 = tpu.matmul %32, %21, %cst_14 {dimension_numbers = #tpu.dot_dimension_numbers<[2], [1], [1], [2], [0, 0, 0, 1, 1, 2], [0], [0]>} : vector<2x8x8xbf16>, vector<2x8x16xbf16>, vector<2x8x16xf32> -> vector<2x8x16xf32>
    "tpu.trace_stop"() : () -> ()
    %34 = tpu.reciprocal %31 {approx = true} : vector<2x8x1xf32> -> vector<2x8x1xf32>
    %35 = vector.broadcast %34 : vector<2x8x1xf32> to vector<2x8x16xf32>
    %36 = arith.mulf %33, %35 : vector<2x8x16xf32>
    %37 = vector.shape_cast %36 : vector<2x8x16xf32> to vector<16x16xf32>
    %38 = arith.truncf %37 : vector<16x16xf32> to vector<16x16xbf16>
    %39 = vector.extract_strided_slice %12 {offsets = [0, 16], sizes = [16, 16], strides = [1, 1]} : vector<16x96xf32> to vector<16x16xf32>
    %40 = vector.shape_cast %39 : vector<16x16xf32> to vector<2x8x16xf32>
    %41 = arith.truncf %40 : vector<2x8x16xf32> to vector<2x8x16xbf16>
    %42 = vector.extract_strided_slice %12 {offsets = [0, 48], sizes = [16, 16], strides = [1, 1]} : vector<16x96xf32> to vector<16x16xf32>
    %43 = vector.shape_cast %42 : vector<16x16xf32> to vector<2x8x16xf32>
    %44 = arith.truncf %43 : vector<2x8x16xf32> to vector<2x8x16xbf16>
    %45 = vector.extract_strided_slice %12 {offsets = [0, 80], sizes = [16, 16], strides = [1, 1]} : vector<16x96xf32> to vector<16x16xf32>
    %46 = vector.shape_cast %45 : vector<16x16xf32> to vector<2x8x16xf32>
    %47 = arith.truncf %46 : vector<2x8x16xf32> to vector<2x8x16xbf16>
    "tpu.trace_start"() <{level = 10 : i32, message = "bqd,bkd->bqk"}> : () -> ()
    %cst_15 = arith.constant dense<0.000000e+00> : vector<2x8x8xf32>
    %48 = tpu.matmul %41, %44, %cst_15 {dimension_numbers = #tpu.dot_dimension_numbers<[2], [2], [1], [1], [0, 0, 0, 1, 1, 1], [0], [0]>} : vector<2x8x16xbf16>, vector<2x8x16xbf16>, vector<2x8x8xf32> -> vector<2x8x8xf32>
    "tpu.trace_stop"() : () -> ()
    %49 = vector.broadcast %5 : vector<2x1x8xf32> to vector<2x8x8xf32>
    %50 = arith.addf %48, %49 : vector<2x8x8xf32>
    %cst_16 = arith.constant dense<0xFF800000> : vector<2x8xf32>
    %51 = vector.multi_reduction <maximumf>, %50, %cst_16 [2] : vector<2x8x8xf32> to vector<2x8xf32>
    %52 = vector.shape_cast %51 : vector<2x8xf32> to vector<2x8x1xf32>
    %53 = vector.broadcast %52 : vector<2x8x1xf32> to vector<2x8x8xf32>
    %54 = arith.subf %50, %53 : vector<2x8x8xf32>
    %55 = math.exp %54 : vector<2x8x8xf32>
    %cst_17 = arith.constant dense<0.000000e+00> : vector<2x8xf32>
    %56 = vector.multi_reduction <add>, %55, %cst_17 [2] : vector<2x8x8xf32> to vector<2x8xf32>
    %57 = vector.shape_cast %56 : vector<2x8xf32> to vector<2x8x1xf32>
    %58 = arith.truncf %55 : vector<2x8x8xf32> to vector<2x8x8xbf16>
    "tpu.trace_start"() <{level = 10 : i32, message = "bqk,bkd->bqd"}> : () -> ()
    %cst_18 = arith.constant dense<0.000000e+00> : vector<2x8x16xf32>
    %59 = tpu.matmul %58, %47, %cst_18 {dimension_numbers = #tpu.dot_dimension_numbers<[2], [1], [1], [2], [0, 0, 0, 1, 1, 2], [0], [0]>} : vector<2x8x8xbf16>, vector<2x8x16xbf16>, vector<2x8x16xf32> -> vector<2x8x16xf32>
    "tpu.trace_stop"() : () -> ()
    %60 = tpu.reciprocal %57 {approx = true} : vector<2x8x1xf32> -> vector<2x8x1xf32>
    %61 = vector.broadcast %60 : vector<2x8x1xf32> to vector<2x8x16xf32>
    %62 = arith.mulf %59, %61 : vector<2x8x16xf32>
    %63 = vector.shape_cast %62 : vector<2x8x16xf32> to vector<16x16xf32>
    %64 = arith.truncf %63 : vector<16x16xf32> to vector<16x16xbf16>
    %65 = tpu.concatenate %38, %64 in 1 : vector<16x16xbf16>, vector<16x16xbf16> -> vector<16x32xbf16>
    %c0_19 = arith.constant 0 : index
    %c0_20 = arith.constant 0 : index
    %c0_21 = arith.constant 0 : index
    %66 = vector.load %arg8[%c0_19, %c0_20, %c0_21] : memref<1x32x32xbf16, #tpu.memory_space<vmem>>, vector<1x32x32xbf16>
    %67 = vector.shape_cast %66 : vector<1x32x32xbf16> to vector<32x32xbf16>
    %cst_22 = arith.constant dense<0.000000e+00> : vector<16x32xf32>
    %68 = tpu.matmul %65, %67, %cst_22 {dimension_numbers = #tpu.dot_dimension_numbers<[1], [0], [0], [1], [0, 0, 1, 1], [], []>} : vector<16x32xbf16>, vector<32x32xbf16>, vector<16x32xf32> -> vector<16x32xf32>
    %c0_23 = arith.constant 0 : index
    %c0_24 = arith.constant 0 : index
    %c0_25 = arith.constant 0 : index
    %69 = vector.load %arg9[%c0_23, %c0_24, %c0_25] : memref<1x1x32xf32, #tpu.memory_space<vmem>>, vector<1x1x32xf32>
    %70 = vector.shape_cast %69 : vector<1x1x32xf32> to vector<1x32xf32>
    %71 = vector.broadcast %70 : vector<1x32xf32> to vector<16x32xf32>
    %72 = arith.addf %68, %71 : vector<16x32xf32>
    %73 = arith.addf %3, %72 : vector<16x32xf32>
    %c0_26 = arith.constant 0 : index
    %c0_27 = arith.constant 0 : index
    %c0_28 = arith.constant 0 : index
    %74 = vector.load %arg10[%c0_26, %c0_27, %c0_28] : memref<1x1x32xf32, #tpu.memory_space<vmem>>, vector<1x1x32xf32>
    %75 = vector.shape_cast %74 : vector<1x1x32xf32> to vector<1x32xf32>
    %c0_29 = arith.constant 0 : index
    %c0_30 = arith.constant 0 : index
    %c0_31 = arith.constant 0 : index
    %76 = vector.load %arg11[%c0_29, %c0_30, %c0_31] : memref<1x1x32xf32, #tpu.memory_space<vmem>>, vector<1x1x32xf32>
    %77 = vector.shape_cast %76 : vector<1x1x32xf32> to vector<1x32xf32>
    %cst_32 = arith.constant dense<0.000000e+00> : vector<16xf32>
    %78 = vector.multi_reduction <add>, %73, %cst_32 [1] : vector<16x32xf32> to vector<16xf32>
    %79 = vector.shape_cast %78 : vector<16xf32> to vector<16x1xf32>
    %cst_33 = arith.constant 3.200000e+01 : f32
    %80 = vector.broadcast %cst_33 : f32 to vector<16x1xf32>
    %81 = arith.divf %79, %80 : vector<16x1xf32>
    %82 = vector.broadcast %81 : vector<16x1xf32> to vector<16x32xf32>
    %83 = arith.subf %73, %82 : vector<16x32xf32>
    %84 = arith.mulf %83, %83 : vector<16x32xf32>
    %cst_34 = arith.constant dense<0.000000e+00> : vector<16xf32>
    %85 = vector.multi_reduction <add>, %84, %cst_34 [1] : vector<16x32xf32> to vector<16xf32>
    %86 = vector.shape_cast %85 : vector<16xf32> to vector<16x1xf32>
    %cst_35 = arith.constant 3.200000e+01 : f32
    %87 = vector.broadcast %cst_35 : f32 to vector<16x1xf32>
    %88 = arith.divf %86, %87 : vector<16x1xf32>
    %89 = vector.broadcast %81 : vector<16x1xf32> to vector<16x32xf32>
    %90 = arith.subf %73, %89 : vector<16x32xf32>
    %cst_36 = arith.constant 9.99999996E-13 : f32
    %91 = vector.broadcast %cst_36 : f32 to vector<16x1xf32>
    %92 = arith.addf %88, %91 : vector<16x1xf32>
    %93 = math.rsqrt %92 : vector<16x1xf32>
    %94 = vector.broadcast %93 : vector<16x1xf32> to vector<16x32xf32>
    %95 = arith.mulf %90, %94 : vector<16x32xf32>
    %96 = vector.broadcast %75 : vector<1x32xf32> to vector<16x32xf32>
    %97 = arith.mulf %95, %96 : vector<16x32xf32>
    %98 = vector.broadcast %77 : vector<1x32xf32> to vector<16x32xf32>
    %99 = arith.addf %97, %98 : vector<16x32xf32>
    %100 = arith.truncf %99 : vector<16x32xf32> to vector<16x32xbf16>
    %c0_37 = arith.constant 0 : index
    %c0_38 = arith.constant 0 : index
    %c0_39 = arith.constant 0 : index
    %101 = vector.load %arg12[%c0_37, %c0_38, %c0_39] : memref<1x32x64xbf16, #tpu.memory_space<vmem>>, vector<1x32x64xbf16>
    %102 = vector.shape_cast %101 : vector<1x32x64xbf16> to vector<32x64xbf16>
    %cst_40 = arith.constant dense<0.000000e+00> : vector<16x64xf32>
    %103 = tpu.matmul %100, %102, %cst_40 {dimension_numbers = #tpu.dot_dimension_numbers<[1], [0], [0], [1], [0, 0, 1, 1], [], []>} : vector<16x32xbf16>, vector<32x64xbf16>, vector<16x64xf32> -> vector<16x64xf32>
    %c0_41 = arith.constant 0 : index
    %c0_42 = arith.constant 0 : index
    %c0_43 = arith.constant 0 : index
    %104 = vector.load %arg13[%c0_41, %c0_42, %c0_43] : memref<1x1x64xf32, #tpu.memory_space<vmem>>, vector<1x1x64xf32>
    %105 = vector.shape_cast %104 : vector<1x1x64xf32> to vector<1x64xf32>
    %106 = vector.broadcast %105 : vector<1x64xf32> to vector<16x64xf32>
    %107 = arith.addf %103, %106 : vector<16x64xf32>
    %cst_44 = arith.constant 5.000000e-01 : f32
    %108 = vector.broadcast %cst_44 : f32 to vector<16x64xf32>
    %109 = arith.mulf %108, %107 : vector<16x64xf32>
    %cst_45 = arith.constant 0.707106769 : f32
    %110 = vector.broadcast %cst_45 : f32 to vector<16x64xf32>
    %111 = arith.mulf %107, %110 : vector<16x64xf32>
    %112 = math.erf %111 : vector<16x64xf32>
    %cst_46 = arith.constant 1.000000e+00 : f32
    %113 = vector.broadcast %cst_46 : f32 to vector<16x64xf32>
    %114 = arith.addf %113, %112 : vector<16x64xf32>
    %115 = arith.mulf %109, %114 : vector<16x64xf32>
    %116 = arith.truncf %115 : vector<16x64xf32> to vector<16x64xbf16>
    %c0_47 = arith.constant 0 : index
    %c0_48 = arith.constant 0 : index
    %c0_49 = arith.constant 0 : index
    %117 = vector.load %arg14[%c0_47, %c0_48, %c0_49] : memref<1x64x32xbf16, #tpu.memory_space<vmem>>, vector<1x64x32xbf16>
    %118 = vector.shape_cast %117 : vector<1x64x32xbf16> to vector<64x32xbf16>
    %cst_50 = arith.constant dense<0.000000e+00> : vector<16x32xf32>
    %119 = tpu.matmul %116, %118, %cst_50 {dimension_numbers = #tpu.dot_dimension_numbers<[1], [0], [0], [1], [0, 0, 1, 1], [], []>} : vector<16x64xbf16>, vector<64x32xbf16>, vector<16x32xf32> -> vector<16x32xf32>
    %c0_51 = arith.constant 0 : index
    %c0_52 = arith.constant 0 : index
    %c0_53 = arith.constant 0 : index
    %120 = vector.load %arg15[%c0_51, %c0_52, %c0_53] : memref<1x1x32xf32, #tpu.memory_space<vmem>>, vector<1x1x32xf32>
    %121 = vector.shape_cast %120 : vector<1x1x32xf32> to vector<1x32xf32>
    %122 = vector.broadcast %121 : vector<1x32xf32> to vector<16x32xf32>
    %123 = arith.addf %119, %122 : vector<16x32xf32>
    %124 = arith.addf %99, %123 : vector<16x32xf32>
    %c0_54 = arith.constant 0 : index
    %c0_55 = arith.constant 0 : index
    %c0_56 = arith.constant 0 : index
    %125 = vector.load %arg16[%c0_54, %c0_55, %c0_56] : memref<1x1x32xf32, #tpu.memory_space<vmem>>, vector<1x1x32xf32>
    %126 = vector.shape_cast %125 : vector<1x1x32xf32> to vector<1x32xf32>
    %c0_57 = arith.constant 0 : index
    %c0_58 = arith.constant 0 : index
    %c0_59 = arith.constant 0 : index
    %127 = vector.load %arg17[%c0_57, %c0_58, %c0_59] : memref<1x1x32xf32, #tpu.memory_space<vmem>>, vector<1x1x32xf32>
    %128 = vector.shape_cast %127 : vector<1x1x32xf32> to vector<1x32xf32>
    %cst_60 = arith.constant dense<0.000000e+00> : vector<16xf32>
    %129 = vector.multi_reduction <add>, %124, %cst_60 [1] : vector<16x32xf32> to vector<16xf32>
    %130 = vector.shape_cast %129 : vector<16xf32> to vector<16x1xf32>
    %cst_61 = arith.constant 3.200000e+01 : f32
    %131 = vector.broadcast %cst_61 : f32 to vector<16x1xf32>
    %132 = arith.divf %130, %131 : vector<16x1xf32>
    %133 = vector.broadcast %132 : vector<16x1xf32> to vector<16x32xf32>
    %134 = arith.subf %124, %133 : vector<16x32xf32>
    %135 = arith.mulf %134, %134 : vector<16x32xf32>
    %cst_62 = arith.constant dense<0.000000e+00> : vector<16xf32>
    %136 = vector.multi_reduction <add>, %135, %cst_62 [1] : vector<16x32xf32> to vector<16xf32>
    %137 = vector.shape_cast %136 : vector<16xf32> to vector<16x1xf32>
    %cst_63 = arith.constant 3.200000e+01 : f32
    %138 = vector.broadcast %cst_63 : f32 to vector<16x1xf32>
    %139 = arith.divf %137, %138 : vector<16x1xf32>
    %140 = vector.broadcast %132 : vector<16x1xf32> to vector<16x32xf32>
    %141 = arith.subf %124, %140 : vector<16x32xf32>
    %cst_64 = arith.constant 9.99999996E-13 : f32
    %142 = vector.broadcast %cst_64 : f32 to vector<16x1xf32>
    %143 = arith.addf %139, %142 : vector<16x1xf32>
    %144 = math.rsqrt %143 : vector<16x1xf32>
    %145 = vector.broadcast %144 : vector<16x1xf32> to vector<16x32xf32>
    %146 = arith.mulf %141, %145 : vector<16x32xf32>
    %147 = vector.broadcast %126 : vector<1x32xf32> to vector<16x32xf32>
    %148 = arith.mulf %146, %147 : vector<16x32xf32>
    %149 = vector.broadcast %128 : vector<1x32xf32> to vector<16x32xf32>
    %150 = arith.addf %148, %149 : vector<16x32xf32>
    %c0_65 = arith.constant 0 : index
    %c0_66 = arith.constant 0 : index
    %151 = vector.load %arg23[%c0_65, %c0_66] : memref<16x32xf32, #tpu.memory_space<vmem>>, vector<16x32xf32>
    tpu.vector_store %arg23[%c0_65, %c0_66], %150 {strides = array<i32>} : memref<16x32xf32, #tpu.memory_space<vmem>>, vector<16x32xf32>,
    %c1_i32 = arith.constant 1 : i32
    %152 = arith.cmpi eq, %arg1, %c1_i32 : i32
    %153 = arith.extui %152 : i1 to i32
    %c0_i32_67 = arith.constant 0 : i32
    %154 = arith.cmpi ne, %153, %c0_i32_67 : i32
    scf.if %154 {
      %c0_68 = arith.constant 0 : index
      %c0_69 = arith.constant 0 : index
      %155 = tpu.strided_load %arg23[%c0_68, %c0_69] {strides = array<i32: 8, 1>} : memref<16x32xf32, #tpu.memory_space<vmem>>, vector<2x32xf32>
      %156 = arith.truncf %155 : vector<2x32xf32> to vector<2x32xbf16>
      %c0_70 = arith.constant 0 : index
      %c0_71 = arith.constant 0 : index
      %157 = vector.load %arg18[%c0_70, %c0_71] : memref<32x32xbf16, #tpu.memory_space<vmem>>, vector<32x32xbf16>
      %cst_72 = arith.constant dense<0.000000e+00> : vector<2x32xf32>
      %158 = tpu.matmul %156, %157, %cst_72 {dimension_numbers = #tpu.dot_dimension_numbers<[1], [0], [0], [1], [0, 0, 1, 1], [], []>} : vector<2x32xbf16>, vector<32x32xbf16>, vector<2x32xf32> -> vector<2x32xf32>
      %c0_73 = arith.constant 0 : index
      %c0_74 = arith.constant 0 : index
      %159 = vector.load %arg19[%c0_73, %c0_74] : memref<1x32xf32, #tpu.memory_space<vmem>>, vector<1x32xf32>
      %160 = vector.broadcast %159 : vector<1x32xf32> to vector<2x32xf32>
      %161 = arith.addf %158, %160 : vector<2x32xf32>
      %162 = math.tanh %161 : vector<2x32xf32>
      %163 = arith.truncf %162 : vector<2x32xf32> to vector<2x32xbf16>
      %c0_75 = arith.constant 0 : index
      %c0_76 = arith.constant 0 : index
      %164 = vector.load %arg20[%c0_75, %c0_76] : memref<32x128xbf16, #tpu.memory_space<vmem>>, vector<32x128xbf16>
      %cst_77 = arith.constant dense<0.000000e+00> : vector<2x128xf32>
      %165 = tpu.matmul %163, %164, %cst_77 {dimension_numbers = #tpu.dot_dimension_numbers<[1], [0], [0], [1], [0, 0, 1, 1], [], []>} : vector<2x32xbf16>, vector<32x128xbf16>, vector<2x128xf32> -> vector<2x128xf32>
      %c0_78 = arith.constant 0 : index
      %c0_79 = arith.constant 0 : index
      %166 = vector.load %arg21[%c0_78, %c0_79] : memref<1x128xf32, #tpu.memory_space<vmem>>, vector<1x128xf32>
      %167 = vector.broadcast %166 : vector<1x128xf32> to vector<2x128xf32>
      %168 = arith.addf %165, %167 : vector<2x128xf32>
      %c0_80 = arith.constant 0 : index
      %c0_81 = arith.constant 0 : index
      %169 = vector.load %arg22[%c0_80, %c0_81] : memref<2x128xf32, #tpu.memory_space<vmem>>, vector<2x128xf32>
      tpu.vector_store %arg22[%c0_80, %c0_81], %168 {strides = array<i32>} : memref<2x128xf32, #tpu.memory_space<vmem>>, vector<2x128xf32>,
    } else {
    }
    return
  }
  func.func @transform_1(%arg0: i32, %arg1: i32) -> (i32, i32, i32) {
    %c0_i32 = arith.constant 0 : i32
    %c0_i32_0 = arith.constant 0 : i32
    %c0_i32_1 = arith.constant 0 : i32
    return %arg0, %c0_i32, %c0_i32_0 : i32, i32, i32
  }
  func.func @transform_2(%arg0: i32, %arg1: i32) -> (i32, i32) {
    %c0_i32 = arith.constant 0 : i32
    %c0_i32_0 = arith.constant 0 : i32
    %c0_i32_1 = arith.constant 0 : i32
    return %c0_i32, %c0_i32_0 : i32, i32
  }
  func.func @transform_3(%arg0: i32, %arg1: i32) -> (i32, i32) {
    %c0_i32 = arith.constant 0 : i32
    %c0_i32_0 = arith.constant 0 : i32
    %c0_i32_1 = arith.constant 0 : i32
    return %c0_i32, %c0_i32_0 : i32, i32
  }
  func.func @transform_4(%arg0: i32, %arg1: i32) -> (i32, i32, i32) {
    %c0_i32 = arith.constant 0 : i32
    %c0_i32_0 = arith.constant 0 : i32
    %c0_i32_1 = arith.constant 0 : i32
    return %arg1, %c0_i32, %c0_i32_0 : i32, i32, i32
  }
  func.func @transform_5(%arg0: i32, %arg1: i32) -> (i32, i32, i32) {
    %c0_i32 = arith.constant 0 : i32
    %c0_i32_0 = arith.constant 0 : i32
    %c0_i32_1 = arith.constant 0 : i32
    return %arg1, %c0_i32, %c0_i32_0 : i32, i32, i32
  }
  func.func @transform_6(%arg0: i32, %arg1: i32) -> (i32, i32, i32) {
    %c0_i32 = arith.constant 0 : i32
    %c0_i32_0 = arith.constant 0 : i32
    %c0_i32_1 = arith.constant 0 : i32
    return %arg1, %c0_i32, %c0_i32_0 : i32, i32, i32
  }
  func.func @transform_7(%arg0: i32, %arg1: i32) -> (i32, i32, i32) {
    %c0_i32 = arith.constant 0 : i32
    %c0_i32_0 = arith.constant 0 : i32
    %c0_i32_1 = arith.constant 0 : i32
    return %arg1, %c0_i32, %c0_i32_0 : i32, i32, i32
  }
  func.func @transform_8(%arg0: i32, %arg1: i32) -> (i32, i32, i32) {
    %c0_i32 = arith.constant 0 : i32
    %c0_i32_0 = arith.constant 0 : i32
    %c0_i32_1 = arith.constant 0 : i32
    return %arg1, %c0_i32, %c0_i32_0 : i32, i32, i32
  }
  func.func @transform_9(%arg0: i32, %arg1: i32) -> (i32, i32, i32) {
    %c0_i32 = arith.constant 0 : i32
    %c0_i32_0 = arith.constant 0 : i32
    %c0_i32_1 = arith.constant 0 : i32
    return %arg1, %c0_i32, %c0_i32_0 : i32, i32, i32
  }
  func.func @transform_10(%arg0: i32, %arg1: i32) -> (i32, i32, i32) {
    %c0_i32 = arith.constant 0 : i32
    %c0_i32_0 = arith.constant 0 : i32
    %c0_i32_1 = arith.constant 0 : i32
    return %arg1, %c0_i32, %c0_i32_0 : i32, i32, i32
  }
  func.func @transform_11(%arg0: i32, %arg1: i32) -> (i32, i32, i32) {
    %c0_i32 = arith.constant 0 : i32
    %c0_i32_0 = arith.constant 0 : i32
    %c0_i32_1 = arith.constant 0 : i32
    return %arg1, %c0_i32, %c0_i32_0 : i32, i32, i32
  }
  func.func @transform_12(%arg0: i32, %arg1: i32) -> (i32, i32, i32) {
    %c0_i32 = arith.constant 0 : i32
    %c0_i32_0 = arith.constant 0 : i32
    %c0_i32_1 = arith.constant 0 : i32
    return %arg1, %c0_i32, %c0_i32_0 : i32, i32, i32
  }
  func.func @transform_13(%arg0: i32, %arg1: i32) -> (i32, i32, i32) {
    %c0_i32 = arith.constant 0 : i32
    %c0_i32_0 = arith.constant 0 : i32
    %c0_i32_1 = arith.constant 0 : i32
    return %arg1, %c0_i32, %c0_i32_0 : i32, i32, i32
  }
  func.func @transform_14(%arg0: i32, %arg1: i32) -> (i32, i32, i32) {
    %c0_i32 = arith.constant 0 : i32
    %c0_i32_0 = arith.constant 0 : i32
    %c0_i32_1 = arith.constant 0 : i32
    return %arg1, %c0_i32, %c0_i32_0 : i32, i32, i32
  }
  func.func @transform_15(%arg0: i32, %arg1: i32) -> (i32, i32, i32) {
    %c0_i32 = arith.constant 0 : i32
    %c0_i32_0 = arith.constant 0 : i32
    %c0_i32_1 = arith.constant 0 : i32
    return %arg1, %c0_i32, %c0_i32_0 : i32, i32, i32
  }
  func.func @transform_16(%arg0: i32, %arg1: i32) -> (i32, i32) {
    %c0_i32 = arith.constant 0 : i32
    %c0_i32_0 = arith.constant 0 : i32
    %c0_i32_1 = arith.constant 0 : i32
    return %c0_i32, %c0_i32_0 : i32, i32
  }
  func.func @transform_17(%arg0: i32, %arg1: i32) -> (i32, i32) {
    %c0_i32 = arith.constant 0 : i32
    %c0_i32_0 = arith.constant 0 : i32
    %c0_i32_1 = arith.constant 0 : i32
    return %c0_i32, %c0_i32_0 : i32, i32
  }
  func.func @transform_18(%arg0: i32, %arg1: i32) -> (i32, i32) {
    %c0_i32 = arith.constant 0 : i32
    %c0_i32_0 = arith.constant 0 : i32
    %c0_i32_1 = arith.constant 0 : i32
    return %c0_i32, %c0_i32_0 : i32, i32
  }
  func.func @transform_19(%arg0: i32, %arg1: i32) -> (i32, i32) {
    %c0_i32 = arith.constant 0 : i32
    %c0_i32_0 = arith.constant 0 : i32
    %c0_i32_1 = arith.constant 0 : i32
    return %c0_i32, %c0_i32_0 : i32, i32
  }
  func.func @transform_20(%arg0: i32, %arg1: i32) -> (i32, i32) {
    %c0_i32 = arith.constant 0 : i32
    %c0_i32_0 = arith.constant 0 : i32
    return %arg0, %c0_i32 : i32, i32
  }
}

</mosaic_0001>

<bundles_post_ra>
// kernel: fake_news_classifier_forward.1
= control target key start
LH: loop header
LB: loop body
LE: loop exit
PB: predicated region body
PF: predicated region fallthrough
CT: control target
= control target key end

     0   :  { %s4748_s0 = inlined_call_operand.hbm [shape: f32[16,32], index: 0, kind: input, shape index: {}]   ;;  %s4749_s1 = inlined_call_operand.hbm [shape: f32[2,1,8], index: 1, kind: input, shape index: {}]   ;;  %s4750_s2 = inlined_call_operand.hbm [shape: f32[1,32], index: 2, kind: input, shape index: {}]   ;;  %s4751_s3 = inlined_call_operand.hbm [shape: f32[1,32], index: 3, kind: input, shape index: {}]   ;;  %s4752_s4 = inlined_call_operand.hbm [shape: bf16[2,32,96], index: 4, kind: input, shape index: {}]   ;;  %s4753_s5 = inlined_call_operand.hbm [shape: f32[2,1,96], index: 5, kind: input, shape index: {}]   ;;  %s4754_s6 = inlined_call_operand.hbm [shape: bf16[2,32,32], index: 6, kind: input, shape index: {}]   ;;  %s4755_s7 = inlined_call_operand.hbm [shape: f32[2,1,32], index: 7, kind: input, shape index: {}]   ;;  %s4756_s8 = inlined_call_operand.hbm [shape: f32[2,1,32], index: 8, kind: input, shape index: {}]   ;;  %s4757_s9 = inlined_call_operand.hbm [shape: f32[2,1,32], index: 9, kind: input, shape index: {}]   ;;  %s4758_s10 = inlined_call_operand.hbm [shape: bf16[2,32,64], index: 10, kind: input, shape index: {}]   ;;  %s4759_s11 = inlined_call_operand.hbm [shape: f32[2,1,64], index: 11, kind: input, shape index: {}]   ;;  %s4760_s12 = inlined_call_operand.hbm [shape: bf16[2,64,32], index: 12, kind: input, shape index: {}]   ;;  %s4761_s13 = inlined_call_operand.hbm [shape: f32[2,1,32], index: 13, kind: input, shape index: {}]   ;;  %s4762_s14 = inlined_call_operand.hbm [shape: f32[2,1,32], index: 14, kind: input, shape index: {}]   ;;  %s4763_s15 = inlined_call_operand.hbm [shape: f32[2,1,32], index: 15, kind: input, shape index: {}]   ;;  %s4764_s16 = inlined_call_operand.hbm [shape: bf16[32,32], index: 16, kind: input, shape index: {}]   ;;  %s4765_s17 = inlined_call_operand.hbm [shape: f32[1,32], index: 17, kind: input, shape index: {}]   ;;  %s4766_s18 = inlined_call_operand.hbm [shape: bf16[32,128], index: 18, kind: input, shape index: {}]   ;;  %s4767_s19 = inlined_call_operand.hbm [shape: f32[1,128], index: 19, kind: input, shape index: {}]   ;;  %s4768_s20 = inlined_call_operand.hbm [shape: f32[2,128], index: 20, kind: output, shape index: {}]  }
   0x1   :  { %4815 = sst [smem:[#allocation60_spill]] %s4748_s0 }
   0x2   :  { %4816 = sst [smem:[#allocation61_spill]] %s4749_s1 }
   0x3   :  { %4817 = sst [smem:[#allocation62_spill]] %s4750_s2 }
   0x4   :  { %4818 = sst [smem:[#allocation63_spill]] %s4751_s3 }
   0x5   :  { %4819 = sst [smem:[#allocation64_spill]] %s4752_s4 }
   0x6   :  { %4820 = sst [smem:[#allocation65_spill]] %s4753_s5 }
   0x7   :  { %4821 = sst [smem:[#allocation66_spill]] %s4754_s6 }
   0x8   :  { %4822 = sst [smem:[#allocation67_spill]] %s4755_s7 }
   0x9   :  { %4823 = sst [smem:[#allocation68_spill]] %s4756_s8 }
   0xa   :  { %4824 = sst [smem:[#allocation69_spill]] %s4757_s9 }
   0xb   :  { %4825 = sst [smem:[#allocation70_spill]] %s4759_s11 }
   0xc   :  { %4826 = sst [smem:[#allocation71_spill]] %s4761_s13 }
   0xd   :  { %4827 = sst [smem:[#allocation72_spill]] %s4763_s15 }
   0xe   :  { %4828 = sst [smem:[#allocation73_spill]] %s4764_s16 }
   0xf   :  { %4829 = sst [smem:[#allocation74_spill]] %s4766_s18 }
  0x10   :  { %4830 = sst [smem:[#allocation75_spill]] %s4767_s19 }
  0x11   :  { %4831 = sst [smem:[#allocation76_spill]] %s4768_s20 }
  0x12   :  { %25 = vsyncpa [#allocation5], 0 }
  0x13   :  { %26 = vsyncpa [#allocation8], 0 }
  0x14   :  { %27 = vsyncpa [#allocation11], 0 }
  0x15   :  { %29 = vsyncpa [#allocation11 + $0x1], 0 }
  0x16   :  { %30 = vsyncpa [#allocation14], 0 }
  0x17   :  { %32 = vsyncpa [#allocation14 + $0x1], 0 }
  0x18   :  { %33 = vsyncpa [#allocation17], 0 }
  0x19   :  { %35 = vsyncpa [#allocation17 + $0x1], 0 }
  0x1a   :  { %36 = vsyncpa [#allocation20], 0 }
  0x1b   :  { %38 = vsyncpa [#allocation20 + $0x1], 0 }
  0x1c   :  { %39 = vsyncpa [#allocation23], 0 }
  0x1d   :  { %41 = vsyncpa [#allocation23 + $0x1], 0 }
  0x1e   :  { %42 = vsyncpa [#allocation26], 0 }
  0x1f   :  { %44 = vsyncpa [#allocation26 + $0x1], 0 }
  0x20   :  { %45 = vsyncpa [#allocation29], 0 }
  0x21   :  { %46 = vsyncpa [#allocation32], 0 }
  0x22   :  { %47 = vsyncpa [#allocation6], 0  ;;  %s3857_s1 = smov 0   ;;  %s3859_s22 = smov 0  }
  0x23   :  { %s3861_s23 = smov 0   ;;  %s3863_s24 = smov 0  }
  0x24   :  { %s3865_s2 = smov 0   ;;  %s3867_s25 = smov 0  }
  0x25 LB: > { %4832 = sst [smem:[#allocation51_spill]] %s3699_s22  ;;  %s3886_s3 = sadd.s32 4294967295, %s3715_s25   ;;  %s3715_s25 = sphi %s3867_s25, %s53_s25   ;;  %s3711_s2 = sphi %s3865_s2, %s4919_s2   ;;  %s3707_s24 = sphi %s3863_s24, %s4918_s24   ;;  %s3703_s23 = sphi %s3861_s23, %s4916_s23   ;;  %s3699_s22 = sphi %s3859_s22, %s4915_s22   ;;  %s3695_s1 = sphi %s3857_s1, %s4914_s1  }
  0x26   : > { %4833 = sst [smem:[#allocation52_spill]] %s3703_s23  ;;  %p153_p0 = scmp.ne.s32.totalorder %s3699_s22, %s3695_s1 }
  0x27   : > { %4834 = sst [smem:[#allocation53_spill]] %s3707_s24  ;;  %p4782_p1 = scmp.eq.s32.totalorder %s3886_s3, 0 }
  0x28   : > { %4835 = sst [smem:[#allocation54_spill]] %s3715_s25  ;;  %p2538_p2 = scmp.ge.s32.totalorder %s3715_s25, 1 }
  0x29   : > { %4836 = sst [smem:[#allocation55_spill]] %s3886_s3  ;;  %p560_p3 = scmp.lt.s32.totalorder %s3715_s25, 3 }
  0x2a   : > { %p3894_p4 = por %p4782_p1, %p153_p0  ;;  %s3717_s28 = smov [#allocation7]  }
  0x2b   : > { %p3898_p5 = pnand %p2538_p2, %p560_p3  ;;  %s589_s4 = sshll.u32 %s3717_s28, 4  ;;  %s590_s4 = int_to_ptr.vmem [resolvable:$true] %s589_s4 }
  0x2c   : > { %s4837_s26 = scalar_select %p3894_p4, 1, 0 }
  0x2d   : > { %s4839_s27 = scalar_select %p3898_p5, 1, 0 }
  0x2e   : > { %4838 = sst [smem:[#allocation56_spill]] %s4837_s26  ;;  %p2824_p6 = pneg %p3898_p5 }
  0x2f   : > { %4840 = sst [smem:[#allocation57_spill]] %s4839_s27  ;;  %s3718_s29 = smov [#allocation28]  }
  0x30   : > { %s610_s30 = sshll.u32 %s3718_s29, 4  ;;  %p3906_p7 = pnand %p2824_p6, %p4782_p1  ;;  %s3910_s30 = int_to_ptr.vmem [resolvable:$true] %s610_s30 }
  0x31   : > { %s3719_s21 = smov [#allocation31]   ;;  %s4842_s26 = sld [smem:[#allocation62_spill]] }
  0x32   : > { %s4841_s0 = scalar_select %p3906_p7, 1, 0 }
  0x33   : > { %s3912_s1 = sshll.u32 %s3719_s21, 4  ;;  %p3922_p9 = pneg %p3906_p7  ;;  %s635_s1 = int_to_ptr.vmem [resolvable:$true] %s3912_s1 }
  0x35   : > { %s4843_s29 = scalar_select %p3922_p9, 1, 0 }
  0x37   : > { %s3019_s28 = scalar_lea.hbm %s4842_s26, 16 }
  0x38   : > { %p3020_p8 = scmp.ne.s32.totalorder %s4842_s26, %s3019_s28  ;;  %p3026_p12 = scmp.lt.u32.totalorder %s3019_s28, %s4842_s26 }
  0x3a   : > { %p3022_p10 = pnand %p3922_p9, %p3020_p8 }
  0x3c   : > { %p3023_p11 = pneg %p3022_p10 }
  0x3e   : > { %p3028_p13 = pnand %p3026_p12, %p3023_p11 }
  0x40   : > { %3031 = shalt.err (!%p3028_p13)
}
  0x41   : > { %s3032_s20 = scalar_lea.vmem %s590_s4, 16  ;;  %s3039_s15 = scalar_lea.vmem %s590_s4, 32 }
  0x42   : > { %p3033_p0 = scmp.ne.s32.totalorder %s590_s4, %s3032_s20  ;;  %p3040_p6 = scmp.lt.s32.totalorder %s590_s4, %s590_s4 }
  0x43   : > { %p3041_p1 = scmp.lt.s32.totalorder %s3039_s15, %s3032_s20 }
  0x44   : > { %p3035_p2 = pnand %p3033_p0, %p3922_p9 }
  0x45   : > { %p3042_p4 = por %p3041_p1, %p3040_p6 }
  0x46   : > { %p3036_p3 = pneg %p3035_p2 }
  0x48   : > { %p3043_p5 = pnand %p3042_p4, %p3036_p3 }
  0x4a   : > { %3046 = shalt.err (!%p3043_p5)
}
  0x4b   : > { %2830 = dma.hbm_to_vmem [thread:$0]  (!%p3906_p7), %s4842_s26, 16, %s590_s4, [#allocation8]  }
  0x4c   : > { %s4844_s16 = sld [smem:[#allocation73_spill]] }
  0x52   : > { %s3047_s21 = scalar_lea.hbm %s4844_s16, 256 }
  0x53   : > { %p3048_p8 = scmp.ne.s32.totalorder %s4844_s16, %s3047_s21  ;;  %p3054_p4 = scmp.lt.u32.totalorder %s3047_s21, %s4844_s16 }
  0x55   : > { %p3050_p10 = pnand %p3048_p8, %p3922_p9 }
  0x57   : > { %p3051_p1 = pneg %p3050_p10 }
  0x59   : > { %p3056_p5 = pnand %p3054_p4, %p3051_p1 }
  0x5b   : > { %3059 = shalt.err (!%p3056_p5)
}
  0x5c   : > { %s3060_s4 = scalar_lea.vmem %s3910_s30, 256  ;;  %p3068_p0 = scmp.lt.s32.totalorder %s3910_s30, %s3910_s30 }
  0x5d   : > { %p3061_p11 = scmp.ne.s32.totalorder %s3910_s30, %s3060_s4  ;;  %p3069_p2 = scmp.lt.s32.totalorder %s3060_s4, %s3060_s4 }
  0x5f   : > { %p3063_p12 = pnand %p3061_p11, %p3922_p9  ;;  %p3070_p3 = por %p3069_p2, %p3068_p0 }
  0x61   : > { %p3064_p13 = pneg %p3063_p12 }
  0x63   : > { %p3071_p6 = pnand %p3070_p3, %p3064_p13 }
  0x65   : > { %3074 = shalt.err (!%p3071_p6)
}
  0x66   : > { %s4788_s11 = smov 64   ;;  %s4790_s13 = smov 4  }
  0x67   : > { %2836 = dma.hbm_to_vmem [thread:$0]  (!%p3906_p7), %s4844_s16, 256, %s3910_s30, [#allocation29], %s4788_s11, %s4788_s11, %s4790_s13  }
  0x68   : > { %s4845_s18 = sld [smem:[#allocation74_spill]] }
  0x6e   : > { %s3075_s21 = scalar_lea.hbm %s4845_s18, 256 }
  0x6f   : > { %p3076_p8 = scmp.ne.s32.totalorder %s4845_s18, %s3075_s21  ;;  %p3082_p4 = scmp.lt.u32.totalorder %s3075_s21, %s4845_s18 }
  0x71   : > { %p3078_p10 = pnand %p3076_p8, %p3922_p9 }
  0x73   : > { %p3079_p1 = pneg %p3078_p10 }
  0x75   : > { %p3084_p5 = pnand %p3082_p4, %p3079_p1 }
  0x77   : > { %3087 = shalt.err (!%p3084_p5)
}
  0x78   : > { %s3088_s24 = scalar_lea.vmem %s635_s1, 256  ;;  %p3096_p0 = scmp.lt.s32.totalorder %s635_s1, %s635_s1 }
  0x79   : > { %p3089_p11 = scmp.ne.s32.totalorder %s635_s1, %s3088_s24  ;;  %p3097_p2 = scmp.lt.s32.totalorder %s3088_s24, %s3088_s24 }
  0x7b   : > { %p3091_p12 = pnand %p3089_p11, %p3922_p9  ;;  %p3098_p3 = por %p3097_p2, %p3096_p0 }
  0x7d   : > { %p3092_p13 = pneg %p3091_p12 }
  0x7f   : > { %p3099_p6 = pnand %p3098_p3, %p3092_p13 }
  0x81   : > { %3102 = shalt.err (!%p3099_p6)
}
  0x82   : > { %2842 = dma.hbm_to_vmem [thread:$0]  (!%p3906_p7), %s4845_s18, 256, %s635_s1, [#allocation32], %s4788_s11, %s4788_s11, %s4790_s13  }
  0x83   : > { %s140_s27 = sadd.s32 1, %s3703_s23  ;;  %s62_s3 = sadd.s32 1, %s3711_s2 }
  0x84   : > { %p147_p8 = scmp.ne.s32.totalorder %s3703_s23, %s3699_s22  ;;  %p63_p10 = scmp.ge.s32.totalorder %s62_s3, 2 }
  0x85   : > { %p148_p1 = scmp.eq.s32.totalorder %s3715_s25, 0  ;;  %p2890_p4 = scmp.lt.s32.totalorder %s3715_s25, 2 }
  0x86   : > { %s3993_s28 = sand.u32 1, %s3715_s25   ;;  %s4921_s3 = smov (%p63_p10, %s62_s3), 0 }
  0x87   : > { %4846 = sst [smem:[#allocation58_spill]] %s4921_s3  ;;  %p149_p5 = por %p148_p1, %p147_p8 }
  0x88   : > { %s137_s21 = ssub.s32 %s3711_s2, %s4921_s3  ;;  %s4000_s20 = sand.u32 1, %s3703_s23  }
  0x89   : > { %p138_p11 = scmp.eq.s32.totalorder %s137_s21, 0  ;;  %s4003_s1 = sshll.u32 %s4000_s20, 4 }
  0x8a   : > { %s4006_s15 = sshll.u32 %s3711_s2, 8  ;;  %s4848_s30 = sld [smem:[#allocation64_spill]] }
  0x8b   : > { %s4009_s4 = scalar_select %p138_p11, %s3703_s23, %s140_s27  }
  0x8c   : > { %s663_s13 = scalar_lea.vmem [#allocation10], %s4003_s1  ;;  %p4022_p12 = pnand %p2890_p4, %p149_p5 }
  0x8d   : > { %4847 = sst [smem:[#allocation59_spill]] %s4009_s4  ;;  %s670_s21 = sshll.u32 %s663_s13, 4  ;;  %s4018_s21 = int_to_ptr.vmem [resolvable:$true] %s670_s21 }
  0x8e   : > { %s4849_s16 = scalar_select %p4022_p12, 1, 0 }
  0x8f   : > { %s4850_s6 = sld [smem:[#allocation66_spill]]  ;;  %p4037_p0 = pneg %p4022_p12 }
  0x90   : > { %s4015_s11 = scalar_lea.hbm %s4848_s30, %s4006_s15  ;;  %s3108_s25 = scalar_lea.hbm %s4848_s30, 512 }
  0x91   : > { %s3103_s3 = scalar_lea.hbm %s4015_s11, 256  ;;  %p3109_p6 = scmp.lt.u32.totalorder %s4015_s11, %s4848_s30 }
  0x92   : > { %p3104_p13 = scmp.ne.s32.totalorder %s4015_s11, %s3103_s3  ;;  %p3110_p8 = scmp.lt.u32.totalorder %s3108_s25, %s3103_s3 }
  0x93   : > { %s4851_s4 = scalar_select %p4037_p0, 1, 0 }
  0x94   : > { %p3106_p2 = pnand %p4037_p0, %p3104_p13  ;;  %p3111_p10 = por %p3110_p8, %p3109_p6 }
  0x95   : > { %s4030_s24 = scalar_lea.hbm %s4850_s6, %s4006_s15  ;;  %p3112_p1 = scmp.lt.u32.totalorder %s3103_s3, %s4015_s11 }
  0x96   : > { %p3107_p3 = pneg %p3106_p2 }
  0x97   : > { %p3113_p4 = por %p3112_p1, %p3111_p10 }
  0x99   : > { %p3114_p5 = pnand %p3113_p4, %p3107_p3 }
  0x9b   : > { %3117 = shalt.err (!%p3114_p5)
}
  0x9c   : > { %s3118_s26 = scalar_lea.vmem %s4018_s21, 256  ;;  %s3722_s23 = smov [#allocation10]  }
  0x9d   : > { %p3119_p11 = scmp.ne.s32.totalorder %s4018_s21, %s3118_s26  ;;  %s3123_s13 = sshll.u32 %s3722_s23, 4  ;;  %s3124_s13 = int_to_ptr.vmem [resolvable:$false] %s3123_s13 }
  0x9e   : > { %s3125_s18 = scalar_lea.vmem %s3124_s13, 512  ;;  %p3126_p7 = scmp.lt.s32.totalorder %s4018_s21, %s3124_s13 }
  0x9f   : > { %p3121_p13 = pnand %p3119_p11, %p4037_p0  ;;  %p3127_p9 = scmp.lt.s32.totalorder %s3125_s18, %s3118_s26 }
  0xa1   : > { %p3122_p2 = pneg %p3121_p13  ;;  %p3128_p6 = por %p3127_p9, %p3126_p7 }
  0xa3   : > { %p3129_p8 = pnand %p3128_p6, %p3122_p2 }
  0xa5   : > { %3132 = shalt.err (!%p3129_p8)
}
  0xa6   : > { %s4852_s25 = smov 4   ;;  %s4853_s3 = smov 64  }
  0xa7   : > { %s4854_s27 = scalar_lea.sflag [#allocation11], %s3993_s28  ;;  %s701_s26 = scalar_lea.vmem [#allocation13], %s4003_s1 }
  0xa8   : > { %2849 = dma.hbm_to_vmem [thread:$0]  (!%p4022_p12), %s4015_s11, 256, %s4018_s21, %s4854_s27, %s4853_s3, %s4853_s3, %s4852_s25  }
  0xa9   : > { %s708_s23 = sshll.u32 %s701_s26, 4  ;;  %s4067_s13 = sshll.u32 %s3711_s2, 4  ;;  %s4069_s23 = int_to_ptr.vmem [resolvable:$true] %s708_s23 }
  0xaa   : > { %s4814_s18 = scalar_lea.sflag [#allocation14], %s3993_s28  ;;  %s3133_s30 = scalar_lea.hbm %s4030_s24, 256 }
  0xab   : > { %p3134_p7 = scmp.ne.s32.totalorder %s4030_s24, %s3133_s30  ;;  %s3138_s7 = scalar_lea.hbm %s4850_s6, 512 }
  0xac   : > { %p3139_p10 = scmp.lt.u32.totalorder %s4030_s24, %s4850_s6  ;;  %p3140_p1 = scmp.lt.u32.totalorder %s3138_s7, %s3133_s30 }
  0xad   : > { %p3136_p9 = pnand %p3134_p7, %p4037_p0  ;;  %p3142_p5 = scmp.lt.u32.totalorder %s3133_s30, %s4030_s24 }
  0xae   : > { %p3141_p4 = por %p3140_p1, %p3139_p10 }
  0xaf   : > { %p3137_p3 = pneg %p3136_p9 }
  0xb0   : > { %p3143_p11 = por %p3142_p5, %p3141_p4 }
  0xb2   : > { %p3144_p13 = pnand %p3143_p11, %p3137_p3 }
  0xb4   : > { %3147 = shalt.err (!%p3144_p13)
}
  0xb5   : > { %s3148_s11 = scalar_lea.vmem %s4069_s23, 256  ;;  %s3723_s9 = smov [#allocation13]  }
  0xb6   : > { %p3149_p2 = scmp.ne.s32.totalorder %s4069_s23, %s3148_s11  ;;  %s3153_s22 = sshll.u32 %s3723_s9, 4  ;;  %s3154_s22 = int_to_ptr.vmem [resolvable:$false] %s3153_s22 }
  0xb7   : > { %s3155_s5 = scalar_lea.vmem %s3154_s22, 512  ;;  %p3156_p7 = scmp.lt.s32.totalorder %s4069_s23, %s3154_s22 }
  0xb8   : > { %p3151_p6 = pnand %p3149_p2, %p4037_p0  ;;  %p3157_p9 = scmp.lt.s32.totalorder %s3155_s5, %s3148_s11 }
  0xba   : > { %p3152_p8 = pneg %p3151_p6  ;;  %p3158_p10 = por %p3157_p9, %p3156_p7 }
  0xbc   : > { %p3159_p1 = pnand %p3158_p10, %p3152_p8 }
  0xbe   : > { %3162 = shalt.err (!%p3159_p1)
}
  0xbf   : > { %2855 = dma.hbm_to_vmem [thread:$0]  (!%p4022_p12), %s4030_s24, 256, %s4069_s23, %s4814_s18, %s4853_s3, %s4853_s3, %s4852_s25  }
  0xc0   : > { %s4855_s8 = sld [smem:[#allocation68_spill]]  ;;  %s738_s21 = scalar_lea.vmem [#allocation16], %s4000_s20 }
  0xc1   : > { %s745_s27 = sshll.u32 %s738_s21, 4  ;;  %s4811_s26 = scalar_lea.sflag [#allocation17], %s3993_s28  ;;  %s746_s27 = int_to_ptr.vmem [resolvable:$true] %s745_s27 }
  0xc6   : > { %s4102_s30 = scalar_lea.hbm %s4855_s8, %s4067_s13  ;;  %s3168_s23 = scalar_lea.hbm %s4855_s8, 32 }
  0xc7   : > { %s3163_s11 = scalar_lea.hbm %s4102_s30, 16  ;;  %p3169_p11 = scmp.lt.u32.totalorder %s4102_s30, %s4855_s8 }
  0xc8   : > { %p3164_p3 = scmp.ne.s32.totalorder %s4102_s30, %s3163_s11  ;;  %p3170_p13 = scmp.lt.u32.totalorder %s3168_s23, %s3163_s11 }
  0xc9   : > { %p3172_p6 = scmp.lt.u32.totalorder %s3163_s11, %s4102_s30 }
  0xca   : > { %p3166_p4 = pnand %p3164_p3, %p4037_p0  ;;  %p3171_p2 = por %p3170_p13, %p3169_p11 }
  0xcc   : > { %p3167_p5 = pneg %p3166_p4  ;;  %p3173_p8 = por %p3172_p6, %p3171_p2 }
  0xce   : > { %p3174_p7 = pnand %p3173_p8, %p3167_p5 }
  0xd0   : > { %3177 = shalt.err (!%p3174_p7)
}
  0xd1   : > { %s3178_s7 = scalar_lea.vmem %s746_s27, 16  ;;  %s3724_s19 = smov [#allocation16]  }
  0xd2   : > { %p3179_p9 = scmp.ne.s32.totalorder %s746_s27, %s3178_s7  ;;  %s3183_s21 = sshll.u32 %s3724_s19, 4  ;;  %s3184_s21 = int_to_ptr.vmem [resolvable:$false] %s3183_s21 }
  0xd3   : > { %s3185_s9 = scalar_lea.vmem %s3184_s21, 32  ;;  %p3186_p3 = scmp.lt.s32.totalorder %s746_s27, %s3184_s21 }
  0xd4   : > { %p3181_p10 = pnand %p3179_p9, %p4037_p0  ;;  %p3187_p4 = scmp.lt.s32.totalorder %s3185_s9, %s3178_s7 }
  0xd6   : > { %p3182_p1 = pneg %p3181_p10  ;;  %p3188_p12 = por %p3187_p4, %p3186_p3 }
  0xd8   : > { %p3189_p11 = pnand %p3188_p12, %p3182_p1 }
  0xda   : > { %3192 = shalt.err (!%p3189_p11)
}
  0xdb   : > { %p4856_p13 = scmp.ne.s32.totalorder %s4849_s16, 0  ;;  %s4129_s23 = scalar_lea.hbm %s4758_s10, %s4006_s15 }
  0xdc   : > { %s773_s22 = scalar_lea.vmem [#allocation19], %s4003_s1  ;;  %s4810_s7 = scalar_lea.sflag [#allocation20], %s3993_s28 }
  0xdd   : > { %2861 = dma.hbm_to_vmem [thread:$0]  (!%p4856_p13), %s4102_s30, 16, %s746_s27, %s4811_s26  }
  0xde   : > { %s780_s5 = sshll.u32 %s773_s22, 4  ;;  %s3193_s19 = scalar_lea.hbm %s4129_s23, 256  ;;  %s4132_s5 = int_to_ptr.vmem [resolvable:$true] %s780_s5 }
  0xdf   : > { %p3194_p12 = scmp.ne.s32.totalorder %s4129_s23, %s3193_s19  ;;  %s3198_s21 = scalar_lea.hbm %s4758_s10, 512 }
  0xe0   : > { %p3199_p6 = scmp.lt.u32.totalorder %s4129_s23, %s4758_s10  ;;  %p3200_p8 = scmp.lt.u32.totalorder %s3198_s21, %s3193_s19 }
  0xe1   : > { %p3196_p5 = pnand %p3194_p12, %p4037_p0  ;;  %p3202_p9 = scmp.lt.u32.totalorder %s3193_s19, %s4129_s23 }
  0xe2   : > { %p3201_p7 = por %p3200_p8, %p3199_p6 }
  0xe3   : > { %p3197_p2 = pneg %p3196_p5 }
  0xe4   : > { %p3203_p10 = por %p3202_p9, %p3201_p7 }
  0xe6   : > { %p3204_p1 = pnand %p3203_p10, %p3197_p2 }
  0xe8   : > { %3207 = shalt.err (!%p3204_p1)
}
  0xe9   : > { %s3208_s1 = scalar_lea.vmem %s4132_s5, 256  ;;  %s3725_s11 = smov [#allocation19]  }
  0xea   : > { %p3209_p3 = scmp.ne.s32.totalorder %s4132_s5, %s3208_s1  ;;  %s3213_s24 = sshll.u32 %s3725_s11, 4  ;;  %s3214_s24 = int_to_ptr.vmem [resolvable:$false] %s3213_s24 }
  0xeb   : > { %s3215_s22 = scalar_lea.vmem %s3214_s24, 512  ;;  %p3216_p12 = scmp.lt.s32.totalorder %s4132_s5, %s3214_s24 }
  0xec   : > { %p3211_p4 = pnand %p3209_p3, %p4037_p0  ;;  %p3217_p5 = scmp.lt.s32.totalorder %s3215_s22, %s3208_s1 }
  0xee   : > { %p3212_p11 = pneg %p3211_p4  ;;  %p3218_p6 = por %p3217_p5, %p3216_p12 }
  0xf0   : > { %p3219_p8 = pnand %p3218_p6, %p3212_p11 }
  0xf2   : > { %3222 = shalt.err (!%p3219_p8)
}
  0xf3   : > { %2867 = dma.hbm_to_vmem [thread:$0]  (!%p4856_p13), %s4129_s23, 256, %s4132_s5, %s4810_s7, %s4853_s3, %s4853_s3, %s4852_s25  }
  0xf4   : > { %s2561_s19 = sshll.u32 %s4000_s20, 5  ;;  %s2631_s30 = sshll.u32 %s3711_s2, 9 }
  0xf5   : > { %s4166_s15 = scalar_lea.hbm %s4760_s12, %s2631_s30  ;;  %s811_s9 = scalar_lea.vmem [#allocation22], %s2561_s19 }
  0xf6   : > { %s818_s1 = sshll.u32 %s811_s9, 4  ;;  %s4809_s11 = scalar_lea.sflag [#allocation23], %s3993_s28  ;;  %s4168_s1 = int_to_ptr.vmem [resolvable:$true] %s818_s1 }
  0xf7   : > { %s3223_s24 = scalar_lea.hbm %s4166_s15, 512  ;;  %s3228_s22 = scalar_lea.hbm %s4760_s12, 1024 }
  0xf8   : > { %p3224_p2 = scmp.ne.s32.totalorder %s4166_s15, %s3223_s24  ;;  %p3229_p10 = scmp.lt.u32.totalorder %s4166_s15, %s4760_s12 }
  0xf9   : > { %p3230_p1 = scmp.lt.u32.totalorder %s3228_s22, %s3223_s24  ;;  %p3232_p4 = scmp.lt.u32.totalorder %s3223_s24, %s4166_s15 }
  0xfa   : > { %p3226_p7 = pnand %p3224_p2, %p4037_p0 }
  0xfb   : > { %p3231_p3 = por %p3230_p1, %p3229_p10 }
  0xfc   : > { %p3227_p9 = pneg %p3226_p7 }
  0xfd   : > { %p3233_p11 = por %p3232_p4, %p3231_p3 }
  0xff   : > { %p3234_p12 = pnand %p3233_p11, %p3227_p9 }
 0x101   : > { %3237 = shalt.err (!%p3234_p12)
}
 0x102   : > { %s3238_s19 = scalar_lea.vmem %s4168_s1, 512  ;;  %s3726_s21 = smov [#allocation22]  }
 0x103   : > { %p3239_p5 = scmp.ne.s32.totalorder %s4168_s1, %s3238_s19  ;;  %s3243_s9 = sshll.u32 %s3726_s21, 4  ;;  %s3244_s9 = int_to_ptr.vmem [resolvable:$false] %s3243_s9 }
 0x104   : > { %s3245_s23 = scalar_lea.vmem %s3244_s9, 1024  ;;  %p3246_p2 = scmp.lt.s32.totalorder %s4168_s1, %s3244_s9 }
 0x105   : > { %p3241_p6 = pnand %p3239_p5, %p4037_p0  ;;  %p3247_p7 = scmp.lt.s32.totalorder %s3245_s23, %s3238_s19 }
 0x107   : > { %p3242_p8 = pneg %p3241_p6  ;;  %p3248_p10 = por %p3247_p7, %p3246_p2 }
 0x109   : > { %p3249_p1 = pnand %p3248_p10, %p3242_p8 }
 0x10b   : > { %3252 = shalt.err (!%p3249_p1)
}
 0x10c   : > { %2873 = dma.hbm_to_vmem [thread:$0]  (!%p4856_p13), %s4166_s15, 512, %s4168_s1, %s4809_s11, %s4853_s3, %s4853_s3, %s4852_s25  }
 0x10d   : > { %s4201_s22 = scalar_lea.hbm %s4762_s14, %s4067_s13  ;;  %s848_s30 = scalar_lea.vmem [#allocation25], %s4000_s20 }
 0x10e   : > { %s855_s27 = sshll.u32 %s848_s30, 4  ;;  %s4808_s19 = scalar_lea.sflag [#allocation26], %s3993_s28  ;;  %s856_s27 = int_to_ptr.vmem [resolvable:$true] %s855_s27 }
 0x10f   : > { %s3253_s21 = scalar_lea.hbm %s4201_s22, 16  ;;  %s3258_s3 = scalar_lea.hbm %s4762_s14, 32 }
 0x110   : > { %p3254_p9 = scmp.ne.s32.totalorder %s4201_s22, %s3253_s21  ;;  %p3259_p11 = scmp.lt.u32.totalorder %s4201_s22, %s4762_s14 }
 0x111   : > { %p3260_p12 = scmp.lt.u32.totalorder %s3258_s3, %s3253_s21  ;;  %p3262_p6 = scmp.lt.u32.totalorder %s3253_s21, %s4201_s22 }
 0x112   : > { %p3256_p3 = pnand %p3254_p9, %p4037_p0 }
 0x113   : > { %p3261_p5 = por %p3260_p12, %p3259_p11 }
 0x114   : > { %p3257_p4 = pneg %p3256_p3 }
 0x115   : > { %p3263_p8 = por %p3262_p6, %p3261_p5 }
 0x117   : > { %p3264_p2 = pnand %p3263_p8, %p3257_p4 }
 0x119   : > { %3267 = shalt.err (!%p3264_p2)
}
 0x11a   : > { %s3268_s23 = scalar_lea.vmem %s856_s27, 16  ;;  %s3727_s24 = smov [#allocation25]  }
 0x11b   : > { %p3269_p7 = scmp.ne.s32.totalorder %s856_s27, %s3268_s23  ;;  %s3273_s5 = sshll.u32 %s3727_s24, 4  ;;  %s3274_s5 = int_to_ptr.vmem [resolvable:$false] %s3273_s5 }
 0x11c   : > { %s3275_s30 = scalar_lea.vmem %s3274_s5, 32  ;;  %p3276_p9 = scmp.lt.s32.totalorder %s856_s27, %s3274_s5 }
 0x11d   : > { %p3271_p10 = pnand %p3269_p7, %p4037_p0  ;;  %p3277_p3 = scmp.lt.s32.totalorder %s3275_s30, %s3268_s23 }
 0x11f   : > { %p3272_p1 = pneg %p3271_p10  ;;  %p3278_p13 = por %p3277_p3, %p3276_p9 }
 0x121   : > { %p3279_p11 = pnand %p3278_p13, %p3272_p1 }
 0x123   : > { %3282 = shalt.err (!%p3279_p11)
}
 0x124   : > { %p4857_p12 = scmp.ne.s32.totalorder %s4849_s16, 0  ;;  %s3728_s21 = smov [#allocation4]  }
 0x125   : > { %s575_s9 = sshll.u32 %s3728_s21, 4  ;;  %s4858_s15 = sld [smem:[#allocation61_spill]]  ;;  %s576_s9 = int_to_ptr.vmem [resolvable:$true] %s575_s9 }
 0x126   : > { %2879 = dma.hbm_to_vmem [thread:$0]  (!%p4857_p12), %s4201_s22, 16, %s856_s27, %s4808_s19  }
 0x127   : > { %p4859_p13 = scmp.ne.s32.totalorder %s4843_s29, 0 }
 0x12b   : > { %s3283_s1 = scalar_lea.hbm %s4858_s15, 32 }
 0x12c   : > { %p3284_p4 = scmp.ne.s32.totalorder %s4858_s15, %s3283_s1  ;;  %p3290_p8 = scmp.lt.u32.totalorder %s3283_s1, %s4858_s15 }
 0x12e   : > { %p3286_p5 = pnand %p3284_p4, %p4859_p13 }
 0x130   : > { %p3287_p6 = pneg %p3286_p5 }
 0x132   : > { %p3292_p2 = pnand %p3290_p8, %p3287_p6 }
 0x134   : > { %3295 = shalt.err (!%p3292_p2)
}
 0x135   : > { %s3296_s22 = scalar_lea.vmem %s576_s9, 32  ;;  %p3304_p9 = scmp.lt.s32.totalorder %s576_s9, %s576_s9 }
 0x136   : > { %p3297_p7 = scmp.ne.s32.totalorder %s576_s9, %s3296_s22  ;;  %p3305_p3 = scmp.lt.s32.totalorder %s3296_s22, %s3296_s22 }
 0x138   : > { %p3299_p10 = pnand %p3297_p7, %p4859_p13  ;;  %p3306_p11 = por %p3305_p3, %p3304_p9 }
 0x13a   : > { %p3300_p1 = pneg %p3299_p10 }
 0x13c   : > { %p3307_p12 = pnand %p3306_p11, %p3300_p1 }
 0x13e   : > { %3310 = shalt.err (!%p3307_p12)
}
 0x13f   : > { %s3729_s27 = smov 16   ;;  %s3730_s21 = smov 1  }
 0x140   : > { %p4860_p4 = scmp.ne.s32.totalorder %s4841_s0, 0  ;;  %s3731_s1 = smov [#allocation9]  }
 0x141   : > { %s600_s24 = sshll.u32 %s3731_s1, 4  ;;  %s3732_s5 = smov [#allocation30]   ;;  %s601_s24 = int_to_ptr.vmem [resolvable:$true] %s600_s24 }
 0x142   : > { %2827 = dma.hbm_to_vmem [thread:$0]  (!%p4860_p4), %s4858_s15, 32, %s576_s9, [#allocation5], %s3729_s27, %s3729_s27, %s3730_s21  }
 0x143   : > { %s624_s23 = sshll.u32 %s3732_s5, 4  ;;  %s4861_s19 = sld [smem:[#allocation63_spill]]  ;;  %s4242_s23 = int_to_ptr.vmem [resolvable:$true] %s624_s23 }
 0x149   : > { %s3311_s11 = scalar_lea.hbm %s4861_s19, 16 }
 0x14a   : > { %p3312_p12 = scmp.ne.s32.totalorder %s4861_s19, %s3311_s11  ;;  %p3318_p8 = scmp.lt.u32.totalorder %s3311_s11, %s4861_s19 }
 0x14c   : > { %p3314_p5 = pnand %p3312_p12, %p4859_p13 }
 0x14e   : > { %p3315_p6 = pneg %p3314_p5 }
 0x150   : > { %p3320_p2 = pnand %p3318_p8, %p3315_p6 }
 0x152   : > { %3323 = shalt.err (!%p3320_p2)
}
 0x153   : > { %s3324_s27 = scalar_lea.vmem %s601_s24, 16  ;;  %s3331_s21 = scalar_lea.vmem %s601_s24, 32 }
 0x154   : > { %p3325_p7 = scmp.ne.s32.totalorder %s601_s24, %s3324_s27  ;;  %p3332_p9 = scmp.lt.s32.totalorder %s601_s24, %s601_s24 }
 0x155   : > { %p3333_p3 = scmp.lt.s32.totalorder %s3331_s21, %s3324_s27 }
 0x156   : > { %p3327_p10 = pnand %p3325_p7, %p4859_p13 }
 0x157   : > { %p3334_p11 = por %p3333_p3, %p3332_p9 }
 0x158   : > { %p3328_p1 = pneg %p3327_p10 }
 0x15a   : > { %p3335_p0 = pnand %p3334_p11, %p3328_p1 }
 0x15c   : > { %3338 = shalt.err (!%p3335_p0)
}
 0x15d   : > { %2833 = dma.hbm_to_vmem [thread:$0]  (!%p4860_p4), %s4861_s19, 16, %s601_s24, [#allocation8]  }
 0x15e   : > { %s3339_s1 = scalar_lea.hbm %s4765_s17, 16 }
 0x15f   : > { %p3340_p12 = scmp.ne.s32.totalorder %s4765_s17, %s3339_s1  ;;  %p3346_p0 = scmp.lt.u32.totalorder %s3339_s1, %s4765_s17 }
 0x161   : > { %p3342_p5 = pnand %p3340_p12, %p4859_p13 }
 0x163   : > { %p3343_p6 = pneg %p3342_p5 }
 0x165   : > { %p3348_p8 = pnand %p3346_p0, %p3343_p6 }
 0x167   : > { %3351 = shalt.err (!%p3348_p8)
}
 0x168   : > { %s3352_s24 = scalar_lea.vmem %s4242_s23, 16  ;;  %s3359_s9 = scalar_lea.vmem %s4242_s23, 32 }
 0x169   : > { %p3353_p2 = scmp.ne.s32.totalorder %s4242_s23, %s3352_s24  ;;  %p3360_p1 = scmp.lt.s32.totalorder %s4242_s23, %s4242_s23 }
 0x16a   : > { %p3361_p9 = scmp.lt.s32.totalorder %s3359_s9, %s3352_s24 }
 0x16b   : > { %p3355_p7 = pnand %p3353_p2, %p4859_p13 }
 0x16c   : > { %p3362_p3 = por %p3361_p9, %p3360_p1 }
 0x16d   : > { %p3356_p10 = pneg %p3355_p7 }
 0x16f   : > { %p3363_p11 = pnand %p3362_p3, %p3356_p10 }
 0x171   : > { %3366 = shalt.err (!%p3363_p11)
}
 0x172   : > { %2839 = dma.hbm_to_vmem [thread:$0]  (!%p4860_p4), %s4765_s17, 16, %s4242_s23, [#allocation29]  }
 0x173   : > { %s3733_s26 = smov [#allocation33]   ;;  %s4862_s1 = sld [smem:[#allocation65_spill]] }
 0x174   : > { %s648_s7 = sshll.u32 %s3733_s26, 4  ;;  %s683_s22 = scalar_lea.vmem [#allocation12], %s4000_s20  ;;  %s649_s7 = int_to_ptr.vmem [resolvable:$true] %s648_s7 }
 0x175   : > { %s690_s25 = sshll.u32 %s683_s22, 4  ;;  %s4864_s18 = sld [smem:[#allocation75_spill]]  ;;  %s691_s25 = int_to_ptr.vmem [resolvable:$true] %s690_s25 }
 0x179   : > { %s4863_s5 = smov %s4862_s1  ;;  %s4290_s30 = scalar_lea.hbm %s4862_s1, %s4067_s13 }
 0x17b   : > { %s3367_s6 = scalar_lea.hbm %s4864_s18, 16 }
 0x17c   : > { %p3368_p12 = scmp.ne.s32.totalorder %s4864_s18, %s3367_s6  ;;  %p3374_p0 = scmp.lt.u32.totalorder %s3367_s6, %s4864_s18 }
 0x17e   : > { %p3370_p5 = pnand %p3368_p12, %p4859_p13 }
 0x180   : > { %p3371_p6 = pneg %p3370_p5 }
 0x182   : > { %p3376_p8 = pnand %p3374_p0, %p3371_p6 }
 0x184   : > { %3379 = shalt.err (!%p3376_p8)
}
 0x185   : > { %s3380_s26 = scalar_lea.vmem %s649_s7, 16  ;;  %s3387_s11 = scalar_lea.vmem %s649_s7, 32 }
 0x186   : > { %p3381_p2 = scmp.ne.s32.totalorder %s649_s7, %s3380_s26  ;;  %p3388_p1 = scmp.lt.s32.totalorder %s649_s7, %s649_s7 }
 0x187   : > { %p3389_p9 = scmp.lt.s32.totalorder %s3387_s11, %s3380_s26 }
 0x188   : > { %p3383_p7 = pnand %p3381_p2, %p4859_p13 }
 0x189   : > { %p3390_p3 = por %p3389_p9, %p3388_p1 }
 0x18a   : > { %p3384_p10 = pneg %p3383_p7 }
 0x18c   : > { %p3391_p11 = pnand %p3390_p3, %p3384_p10 }
 0x18e   : > { %3394 = shalt.err (!%p3391_p11)
}
 0x18f   : > { %2845 = dma.hbm_to_vmem [thread:$0]  (!%p4860_p4), %s4864_s18, 16, %s649_s7, [#allocation32]  }
 0x190   : > { %s3395_s6 = scalar_lea.hbm %s4290_s30, 16  ;;  %p4865_p12 = scmp.ne.s32.totalorder %s4851_s4, 0 }
 0x191   : > { %p3396_p13 = scmp.ne.s32.totalorder %s4290_s30, %s3395_s6  ;;  %s3400_s22 = scalar_lea.hbm %s4863_s5, 32 }
 0x192   : > { %p3401_p0 = scmp.lt.u32.totalorder %s4290_s30, %s4863_s5  ;;  %p3402_p8 = scmp.lt.u32.totalorder %s3400_s22, %s3395_s6 }
 0x193   : > { %p3398_p5 = pnand %p3396_p13, %p4865_p12  ;;  %p3404_p7 = scmp.lt.u32.totalorder %s3395_s6, %s4290_s30 }
 0x194   : > { %p3403_p2 = por %p3402_p8, %p3401_p0 }
 0x195   : > { %p3399_p6 = pneg %p3398_p5 }
 0x196   : > { %p3405_p10 = por %p3404_p7, %p3403_p2 }
 0x198   : > { %p3406_p1 = pnand %p3405_p10, %p3399_p6 }
 0x19a   : > { %3409 = shalt.err (!%p3406_p1)
}
 0x19b   : > { %s3410_s7 = scalar_lea.vmem %s691_s25, 16  ;;  %s3734_s9 = smov [#allocation12]  }
 0x19c   : > { %p3411_p4 = scmp.ne.s32.totalorder %s691_s25, %s3410_s7  ;;  %s3415_s27 = sshll.u32 %s3734_s9, 4  ;;  %s3416_s27 = int_to_ptr.vmem [resolvable:$false] %s3415_s27 }
 0x19d   : > { %s3417_s23 = scalar_lea.vmem %s3416_s27, 32  ;;  %p3418_p11 = scmp.lt.s32.totalorder %s691_s25, %s3416_s27 }
 0x19e   : > { %p3413_p9 = pnand %p3411_p4, %p4865_p12  ;;  %p3419_p13 = scmp.lt.s32.totalorder %s3417_s23, %s3410_s7 }
 0x1a0   : > { %p3414_p3 = pneg %p3413_p9  ;;  %p3420_p5 = por %p3419_p13, %p3418_p11 }
 0x1a2   : > { %p3421_p0 = pnand %p3420_p5, %p3414_p3 }
 0x1a4   : > { %3424 = shalt.err (!%p3421_p0)
}
 0x1a5   : > { %p4866_p8 = scmp.ne.s32.totalorder %s4849_s16, 0  ;;  %s4867_s21 = scalar_lea.sflag [#allocation11], %s3993_s28 }
 0x1a6   : > { %s4868_s8 = sld [smem:[#allocation67_spill]]  ;;  %s721_s6 = scalar_lea.vmem [#allocation15], %s4000_s20 }
 0x1a7   : > { %2852 = dma.hbm_to_vmem [thread:$0]  (!%p4866_p8), %s4290_s30, 16, %s691_s25, %s4867_s21  }
 0x1a8   : > { %s728_s29 = sshll.u32 %s721_s6, 4  ;;  %s729_s29 = int_to_ptr.vmem [resolvable:$true] %s728_s29 }
 0x1ac   : > { %s4334_s3 = scalar_lea.hbm %s4868_s8, %s4067_s13  ;;  %s3430_s30 = scalar_lea.hbm %s4868_s8, 32 }
 0x1ad   : > { %s3425_s1 = scalar_lea.hbm %s4334_s3, 16  ;;  %p3431_p10 = scmp.lt.u32.totalorder %s4334_s3, %s4868_s8 }
 0x1ae   : > { %p3426_p6 = scmp.ne.s32.totalorder %s4334_s3, %s3425_s1  ;;  %p3432_p1 = scmp.lt.u32.totalorder %s3430_s30, %s3425_s1 }
 0x1af   : > { %p3434_p9 = scmp.lt.u32.totalorder %s3425_s1, %s4334_s3 }
 0x1b0   : > { %p3428_p2 = pnand %p3426_p6, %p4865_p12  ;;  %p3433_p4 = por %p3432_p1, %p3431_p10 }
 0x1b2   : > { %p3429_p7 = pneg %p3428_p2  ;;  %p3435_p3 = por %p3434_p9, %p3433_p4 }
 0x1b4   : > { %p3436_p11 = pnand %p3435_p3, %p3429_p7 }
 0x1b6   : > { %3439 = shalt.err (!%p3436_p11)
}
 0x1b7   : > { %s3440_s7 = scalar_lea.vmem %s729_s29, 16  ;;  %s3735_s9 = smov [#allocation15]  }
 0x1b8   : > { %p3441_p13 = scmp.ne.s32.totalorder %s729_s29, %s3440_s7  ;;  %s3445_s27 = sshll.u32 %s3735_s9, 4  ;;  %s3446_s27 = int_to_ptr.vmem [resolvable:$false] %s3445_s27 }
 0x1b9   : > { %s3447_s23 = scalar_lea.vmem %s3446_s27, 32  ;;  %p3448_p6 = scmp.lt.s32.totalorder %s729_s29, %s3446_s27 }
 0x1ba   : > { %p3443_p5 = pnand %p3441_p13, %p4865_p12  ;;  %p3449_p2 = scmp.lt.s32.totalorder %s3447_s23, %s3440_s7 }
 0x1bc   : > { %p3444_p0 = pneg %p3443_p5  ;;  %p3450_p8 = por %p3449_p2, %p3448_p6 }
 0x1be   : > { %p3451_p1 = pnand %p3450_p8, %p3444_p0 }
 0x1c0   : > { %3454 = shalt.err (!%p3451_p1)
}
 0x1c1   : > { %p4869_p10 = scmp.ne.s32.totalorder %s4849_s16, 0  ;;  %s4870_s21 = scalar_lea.sflag [#allocation14], %s3993_s28 }
 0x1c2   : > { %s4871_s6 = sld [smem:[#allocation69_spill]]  ;;  %s755_s22 = scalar_lea.vmem [#allocation18], %s4000_s20 }
 0x1c3   : > { %2858 = dma.hbm_to_vmem [thread:$0]  (!%p4869_p10), %s4334_s3, 16, %s729_s29, %s4870_s21  }
 0x1c4   : > { %s762_s0 = sshll.u32 %s755_s22, 4  ;;  %s763_s0 = int_to_ptr.vmem [resolvable:$true] %s762_s0 }
 0x1c8   : > { %s4360_s1 = scalar_lea.hbm %s4871_s6, %s4067_s13  ;;  %s3460_s3 = scalar_lea.hbm %s4871_s6, 32 }
 0x1c9   : > { %s3455_s30 = scalar_lea.hbm %s4360_s1, 16  ;;  %p3461_p9 = scmp.lt.u32.totalorder %s4360_s1, %s4871_s6 }
 0x1ca   : > { %p3456_p8 = scmp.ne.s32.totalorder %s4360_s1, %s3455_s30  ;;  %p3462_p3 = scmp.lt.u32.totalorder %s3460_s3, %s3455_s30 }
 0x1cb   : > { %p3464_p13 = scmp.lt.u32.totalorder %s3455_s30, %s4360_s1 }
 0x1cc   : > { %p3458_p7 = pnand %p3456_p8, %p4865_p12  ;;  %p3463_p11 = por %p3462_p3, %p3461_p9 }
 0x1ce   : > { %p3459_p4 = pneg %p3458_p7  ;;  %p3465_p5 = por %p3464_p13, %p3463_p11 }
 0x1d0   : > { %p3466_p0 = pnand %p3465_p5, %p3459_p4 }
 0x1d2   : > { %3469 = shalt.err (!%p3466_p0)
}
 0x1d3   : > { %s3470_s9 = scalar_lea.vmem %s763_s0, 16  ;;  %s3736_s27 = smov [#allocation18]  }
 0x1d4   : > { %p3471_p6 = scmp.ne.s32.totalorder %s763_s0, %s3470_s9  ;;  %s3475_s23 = sshll.u32 %s3736_s27, 4  ;;  %s3476_s23 = int_to_ptr.vmem [resolvable:$false] %s3475_s23 }
 0x1d5   : > { %s3477_s21 = scalar_lea.vmem %s3476_s23, 32  ;;  %p3478_p8 = scmp.lt.s32.totalorder %s763_s0, %s3476_s23 }
 0x1d6   : > { %p3473_p2 = pnand %p3471_p6, %p4865_p12  ;;  %p3479_p7 = scmp.lt.s32.totalorder %s3477_s21, %s3470_s9 }
 0x1d8   : > { %p3474_p1 = pneg %p3473_p2  ;;  %p3480_p10 = por %p3479_p7, %p3478_p8 }
 0x1da   : > { %p3481_p3 = pnand %p3480_p10, %p3474_p1 }
 0x1dc   : > { %3484 = shalt.err (!%p3481_p3)
}
 0x1dd   : > { %p4872_p9 = scmp.ne.s32.totalorder %s4849_s16, 0  ;;  %s4873_s26 = scalar_lea.sflag [#allocation17], %s3993_s28 }
 0x1de   : > { %s4874_s30 = sld [smem:[#allocation70_spill]]  ;;  %s793_s24 = scalar_lea.vmem [#allocation21], %s4000_s20 }
 0x1df   : > { %2864 = dma.hbm_to_vmem [thread:$0]  (!%p4872_p9), %s4360_s1, 16, %s763_s0, %s4873_s26  }
 0x1e0   : > { %s800_s3 = sshll.u32 %s793_s24, 4  ;;  %s801_s3 = int_to_ptr.vmem [resolvable:$true] %s800_s3 }
 0x1e4   : > { %s4386_s25 = scalar_lea.hbm %s4874_s30, %s4067_s13  ;;  %s3490_s1 = scalar_lea.hbm %s4874_s30, 32 }
 0x1e5   : > { %s3485_s29 = scalar_lea.hbm %s4386_s25, 16  ;;  %p3491_p13 = scmp.lt.u32.totalorder %s4386_s25, %s4874_s30 }
 0x1e6   : > { %p3486_p10 = scmp.ne.s32.totalorder %s4386_s25, %s3485_s29  ;;  %p3492_p5 = scmp.lt.u32.totalorder %s3490_s1, %s3485_s29 }
 0x1e7   : > { %p3494_p6 = scmp.lt.u32.totalorder %s3485_s29, %s4386_s25 }
 0x1e8   : > { %p3488_p4 = pnand %p3486_p10, %p4865_p12  ;;  %p3493_p0 = por %p3492_p5, %p3491_p13 }
 0x1ea   : > { %p3489_p11 = pneg %p3488_p4  ;;  %p3495_p2 = por %p3494_p6, %p3493_p0 }
 0x1ec   : > { %p3496_p1 = pnand %p3495_p2, %p3489_p11 }
 0x1ee   : > { %3499 = shalt.err (!%p3496_p1)
}
 0x1ef   : > { %s3500_s23 = scalar_lea.vmem %s801_s3, 16  ;;  %s3737_s21 = smov [#allocation21]  }
 0x1f0   : > { %p3501_p8 = scmp.ne.s32.totalorder %s801_s3, %s3500_s23  ;;  %s3505_s26 = sshll.u32 %s3737_s21, 4  ;;  %s3506_s26 = int_to_ptr.vmem [resolvable:$false] %s3505_s26 }
 0x1f1   : > { %s3507_s11 = scalar_lea.vmem %s3506_s26, 32  ;;  %p3508_p10 = scmp.lt.s32.totalorder %s801_s3, %s3506_s26 }
 0x1f2   : > { %p3503_p7 = pnand %p3501_p8, %p4865_p12  ;;  %p3509_p4 = scmp.lt.s32.totalorder %s3507_s11, %s3500_s23 }
 0x1f4   : > { %p3504_p3 = pneg %p3503_p7  ;;  %p3510_p9 = por %p3509_p4, %p3508_p10 }
 0x1f6   : > { %p3511_p5 = pnand %p3510_p9, %p3504_p3 }
 0x1f8   : > { %3514 = shalt.err (!%p3511_p5)
}
 0x1f9   : > { %p4875_p13 = scmp.ne.s32.totalorder %s4849_s16, 0  ;;  %s4876_s22 = scalar_lea.sflag [#allocation20], %s3993_s28 }
 0x1fa   : > { %s4877_s7 = sld [smem:[#allocation71_spill]]  ;;  %s831_s1 = scalar_lea.vmem [#allocation24], %s4000_s20 }
 0x1fb   : > { %2870 = dma.hbm_to_vmem [thread:$0]  (!%p4875_p13), %s4386_s25, 16, %s801_s3, %s4876_s22  }
 0x1fc   : > { %s838_s0 = sshll.u32 %s831_s1, 4  ;;  %s839_s0 = int_to_ptr.vmem [resolvable:$true] %s838_s0 }
 0x200   : > { %s4412_s9 = scalar_lea.hbm %s4877_s7, %s4067_s13  ;;  %s3520_s25 = scalar_lea.hbm %s4877_s7, 32 }
 0x201   : > { %s3515_s27 = scalar_lea.hbm %s4412_s9, 16  ;;  %p3521_p6 = scmp.lt.u32.totalorder %s4412_s9, %s4877_s7 }
 0x202   : > { %p3516_p9 = scmp.ne.s32.totalorder %s4412_s9, %s3515_s27  ;;  %p3522_p2 = scmp.lt.u32.totalorder %s3520_s25, %s3515_s27 }
 0x203   : > { %p3524_p8 = scmp.lt.u32.totalorder %s3515_s27, %s4412_s9 }
 0x204   : > { %p3518_p11 = pnand %p3516_p9, %p4865_p12  ;;  %p3523_p1 = por %p3522_p2, %p3521_p6 }
 0x206   : > { %p3519_p0 = pneg %p3518_p11  ;;  %p3525_p7 = por %p3524_p8, %p3523_p1 }
 0x208   : > { %p3526_p3 = pnand %p3525_p7, %p3519_p0 }
 0x20a   : > { %3529 = shalt.err (!%p3526_p3)
}
 0x20b   : > { %s3530_s11 = scalar_lea.vmem %s839_s0, 16  ;;  %s3738_s22 = smov [#allocation24]  }
 0x20c   : > { %p3531_p10 = scmp.ne.s32.totalorder %s839_s0, %s3530_s11  ;;  %s3535_s24 = sshll.u32 %s3738_s22, 4  ;;  %s3536_s24 = int_to_ptr.vmem [resolvable:$false] %s3535_s24 }
 0x20d   : > { %s3537_s29 = scalar_lea.vmem %s3536_s24, 32  ;;  %p3538_p9 = scmp.lt.s32.totalorder %s839_s0, %s3536_s24 }
 0x20e   : > { %p3533_p4 = pnand %p3531_p10, %p4865_p12  ;;  %p3539_p11 = scmp.lt.s32.totalorder %s3537_s29, %s3530_s11 }
 0x210   : > { %p3534_p5 = pneg %p3533_p4  ;;  %p3540_p13 = por %p3539_p11, %p3538_p9 }
 0x212   : > { %p3541_p2 = pnand %p3540_p13, %p3534_p5 }
 0x214   : > { %3544 = shalt.err (!%p3541_p2)
}
 0x215   : > { %p4878_p6 = scmp.ne.s32.totalorder %s4849_s16, 0  ;;  %s4879_s1 = scalar_lea.sflag [#allocation23], %s3993_s28 }
 0x216   : > { %s4880_s21 = sld [smem:[#allocation72_spill]]  ;;  %s865_s3 = scalar_lea.vmem [#allocation27], %s4000_s20 }
 0x217   : > { %2876 = dma.hbm_to_vmem [thread:$0]  (!%p4878_p6), %s4412_s9, 16, %s839_s0, %s4879_s1  }
 0x218   : > { %s872_s26 = sshll.u32 %s865_s3, 4  ;;  %s873_s26 = int_to_ptr.vmem [resolvable:$true] %s872_s26 }
 0x21c   : > { %s4438_s25 = scalar_lea.hbm %s4880_s21, %s4067_s13  ;;  %s3550_s9 = scalar_lea.hbm %s4880_s21, 32 }
 0x21d   : > { %s3545_s11 = scalar_lea.hbm %s4438_s25, 16  ;;  %p3551_p8 = scmp.lt.u32.totalorder %s4438_s25, %s4880_s21 }
 0x21e   : > { %p3546_p13 = scmp.ne.s32.totalorder %s4438_s25, %s3545_s11  ;;  %p3552_p7 = scmp.lt.u32.totalorder %s3550_s9, %s3545_s11 }
 0x21f   : > { %p3554_p10 = scmp.lt.u32.totalorder %s3545_s11, %s4438_s25 }
 0x220   : > { %p3548_p0 = pnand %p3546_p13, %p4865_p12  ;;  %p3553_p3 = por %p3552_p7, %p3551_p8 }
 0x222   : > { %p3549_p1 = pneg %p3548_p0  ;;  %p3555_p4 = por %p3554_p10, %p3553_p3 }
 0x224   : > { %p3556_p5 = pnand %p3555_p4, %p3549_p1 }
 0x226   : > { %3559 = shalt.err (!%p3556_p5)
}
 0x227   : > { %s3560_s20 = scalar_lea.vmem %s873_s26, 16  ;;  %s3739_s13 = smov [#allocation27]  }
 0x228   : > { %p3561_p9 = scmp.ne.s32.totalorder %s873_s26, %s3560_s20  ;;  %s3565_s1 = sshll.u32 %s3739_s13, 4  ;;  %s3566_s1 = int_to_ptr.vmem [resolvable:$false] %s3565_s1 }
 0x229   : > { %s3567_s27 = scalar_lea.vmem %s3566_s1, 32  ;;  %p3568_p13 = scmp.lt.s32.totalorder %s873_s26, %s3566_s1 }
 0x22a   : > { %p3563_p11 = pnand %p3561_p9, %p4865_p12  ;;  %p3569_p0 = scmp.lt.s32.totalorder %s3567_s27, %s3560_s20 }
 0x22c   : > { %p3564_p2 = pneg %p3563_p11  ;;  %p3570_p6 = por %p3569_p0, %p3568_p13 }
 0x22e   : > { %p3571_p7 = pnand %p3570_p6, %p3564_p2 }
 0x230   : > { %3574 = shalt.err (!%p3571_p7)
}
 0x231   : > { %p4881_p8 = scmp.ne.s32.totalorder %s4849_s16, 0  ;;  %s4882_s23 = scalar_lea.sflag [#allocation26], %s3993_s28 }
 0x232   : > { %s4883_s3 = sld [smem:[#allocation57_spill]] }
 0x233   : > { %2882 = dma.hbm_to_vmem [thread:$0]  (!%p4881_p8), %s4438_s25, 16, %s873_s26, %s4882_s23  }
 0x238   : > { %p4884_p1 = scmp.ne.s32.totalorder %s4883_s3, 0 }
 0x239   : > { %s4885_s4 = sld [smem:[#allocation55_spill]] (!%p4884_p1) }
 0x23a   : > { %881 = sbr.rel (%p4884_p1) target bundleno = 4186 (0x105a), region = 96 }
 0x23f   : > { %p4886_p12 = scmp.eq.s32.totalorder (!%p4884_p1), %s4885_s4, 0 }
 0x241   : > { %3648 = dma.done.wait (%p4886_p12), [#allocation5], 32   ;;  %p4887_p3 = pmov %p4886_p12 }
 0x243   : > { %3650 = vsyncadd (%p4887_p3), [#allocation5], 4294967264  ;;  %p4888_p10 = pmov %p4887_p3 }
 0x244   : > { %p4889_p6 = pmov %p4887_p3 }
 0x245   : > { %3652 = dma.done.wait (%p4888_p10), [#allocation8], 32  }
 0x246   : > { %3654 = vsyncadd (%p4889_p6), [#allocation8], 4294967264  ;;  %s4890_s16 = sld [smem:[#allocation51_spill]]  ;;  %s4891_s28 = sld [smem:[#allocation56_spill]] }
 0x247   : > { %s4471_s11 = sand.u32 1, %s4885_s4  }
 0x248   : > { %s896_s22 = scalar_lea.sflag [#allocation11], %s4471_s11 }
 0x24c   : > { %s4474_s25 = sand.u32 1, %s4890_s16   ;;  %p4892_p4 = scmp.ne.s32.totalorder %s4891_s28, 0 }
 0x24d   : > { %s4477_s26 = sshll.u32 %s4474_s25, 4 }
 0x24e   : > { %s899_s24 = scalar_lea.vmem [#allocation10], %s4477_s26 }
 0x24f   : > { %3656 = dma.done.wait (%p4892_p4), %s896_s22, 272  }
 0x250   : > { %3658 = vsyncadd (%p4892_p4), %s896_s22, 4294967024  ;;  %s907_s9 = scalar_lea.vmem [#allocation12], %s4474_s25  ;;  %s913_s0 = scalar_lea.sflag [#allocation14], %s4471_s11 }
 0x251   : > { %3660 = dma.done.wait (%p4892_p4), %s913_s0, 272  }
 0x252   : > { %3662 = vsyncadd (%p4892_p4), %s913_s0, 4294967024  ;;  %s930_s13 = scalar_lea.sflag [#allocation17], %s4471_s11 }
 0x253   : > { %3664 = dma.done.wait (%p4892_p4), %s930_s13, 32  }
 0x254   : > { %3666 = vsyncadd (%p4892_p4), %s930_s13, 4294967264  ;;  %s946_s23 = scalar_lea.sflag [#allocation20], %s4471_s11 }
 0x255   : > { %3668 = dma.done.wait (%p4892_p4), %s946_s23, 272  }
 0x256   : > { %3670 = vsyncadd (%p4892_p4), %s946_s23, 4294967024  ;;  %s2574_s16 = sshll.u32 %s4474_s25, 5  ;;  %s963_s0 = scalar_lea.sflag [#allocation23], %s4471_s11 }
 0x257   : > { %s4509_s13 = scalar_lea.vmem [#allocation22], %s2574_s16 }
 0x258   : > { %3672 = dma.done.wait (%p4892_p4), %s963_s0, 528  }
 0x259   : > { %3674 = vsyncadd (%p4892_p4), %s963_s0, 4294966768  ;;  %s980_s23 = scalar_lea.sflag [#allocation26], %s4471_s11 }
 0x25a   : > { %3676 = dma.done.wait (%p4892_p4), %s980_s23, 32  }
 0x25b   : > { %3678 = vsyncadd (%p4892_p4), %s980_s23, 4294967264  ;;  %p4893_p5 = pmov %p4887_p3 }
 0x25c   : > { %p4894_p9 = pmov %p4887_p3 }
 0x25d   : > { %3680 = dma.done.wait (%p4893_p5), [#allocation29], 272  }
 0x25e   : > { %3682 = vsyncadd (%p4894_p9), [#allocation29], 4294967024  ;;  %p4895_p11 = pmov %p4887_p3 }
 0x25f   : > { %p4896_p2 = pmov %p4887_p3 }
 0x260   : > { %3684 = dma.done.wait (%p4895_p11), [#allocation32], 272  }
 0x261   : > { %3686 = vsyncadd (%p4896_p2), [#allocation32], 4294967024  ;;  %s4897_s11 = sld [smem:[#allocation53_spill]] }
 0x267   : > { %p2579_p13 = scmp.ne.s32.totalorder %s4897_s11, 0 }
 0x268   : > { %s3740_s0 = smov (!%p2579_p13), [#allocation2]   ;;  %s4898_s16 = sld [smem:[#allocation60_spill]] (!%p2579_p13) }
 0x269   : > { %1108 = sbr.rel (%p2579_p13) target bundleno = 957 (0x3bd), region = 176  ;;  %s1119_s28 = sshll.u32 (!%p2579_p13), %s3740_s0, 4  ;;  %s1120_s28 = int_to_ptr.vmem [resolvable:$true] %s1119_s28 }
 0x26e   : > { %s3575_s27 = scalar_lea.hbm (!%p2579_p13), %s4898_s16, 256 }
 0x26f   : > { %p3576_p0 = scmp.ne.s32.totalorder (!%p2579_p13), %s4898_s16, %s3575_s27  ;;  %p3579_p7 = scmp.lt.u32.totalorder (!%p2579_p13), %s3575_s27, %s4898_s16 }
 0x271   : > { %p3581_p8 = pnand %p3579_p7, %p3576_p0 }
 0x273   : > { %3584 = shalt.err (!%p3581_p8)  }
 0x274   : > { %s3585_s4 = scalar_lea.vmem %s1120_s28, 256  ;;  %p3590_p12 = scmp.lt.s32.totalorder %s1120_s28, %s1120_s28 }
 0x275   : > { %p3586_p1 = scmp.ne.s32.totalorder %s1120_s28, %s3585_s4  ;;  %p3591_p3 = scmp.lt.s32.totalorder %s3585_s4, %s3585_s4 }
 0x277   : > { %p3592_p10 = por %p3591_p3, %p3590_p12 }
 0x279   : > { %p3593_p6 = pnand %p3592_p10, %p3586_p1 }
 0x27b   : > { %3596 = shalt.err (!%p3593_p6)  }
 0x27c   : > { %1122 = dma.hbm_to_vmem [thread:$0]  %s4898_s16, 256, %s1120_s28, [#allocation3] }
 0x27d   : > { %3687 = dma.done.wait [#allocation3], 256 }
 0x27e   : > { %3688 = vsyncadd [#allocation3], 4294967040  ;;  %vm1130_vm0 = vcmask 261120   ;;  %v1126_v0 = vld [vmem:[#allocation2] sm:$0xff]  ;;  %v1127_v1 = vld [vmem:[#allocation2 + $0x8] sm:$0xff] }
 0x27f   : > { %v1131_v2 = vsel %vm1130_vm0, %v1126_v0, 0.0  ;;  %v1134_v3 = vsel %vm1130_vm0, %v1127_v1, 0.0  ;;  %v2580_v21 = vld [vmem:[#allocation7] ss:$0 sm:$0xff]  ;;  %v2581_v23 = vld [vmem:[#allocation9] ss:$0 sm:$0xff] }
 0x280   : > { %1132 = vadd.xlane.f32.xlu0 %v1131_v2 }
 0x284   : > { %1135 = vadd.xlane.f32.xlu0 %v1134_v3 }
 0x30d   : > { %v1133_v4 = vpop.xlane.xlu0 %1132 }
 0x30e   : > { %v1138_v5 = vmul.f32 0.03125, %v1133_v4 }
 0x310   : > { %v1140_v6 = vsub.f32 %v1126_v0, %v1138_v5 }
 0x311   : > { %v1136_v7 = vpop.xlane.xlu0 %1135 }
 0x312   : > { %v1139_v8 = vmul.f32 0.03125, %v1136_v7  ;;  %v1142_v9 = vmul.f32 %v1140_v6, %v1140_v6 }
 0x314   : > { %v1141_v10 = vsub.f32 %v1127_v1, %v1139_v8  ;;  %v1144_v11 = vsel %vm1130_vm0, %v1142_v9, 0.0 }
 0x315   : > { %1145 = vadd.xlane.f32.xlu1 %v1144_v11 }
 0x316   : > { %v1143_v12 = vmul.f32 %v1141_v10, %v1141_v10 }
 0x318   : > { %v1147_v13 = vsel %vm1130_vm0, %v1143_v12, 0.0 }
 0x319   : > { %1148 = vadd.xlane.f32.xlu1 %v1147_v13 }
 0x3a2   : > { %v1146_v14 = vpop.xlane.xlu1 %1145 }
 0x3a3   : > { %v1150_v15 = vmul.f32 0.03125, %v1146_v14 }
 0x3a5   : > { %v1152_v16 = vadd.f32 1e-12, %v1150_v15 }
 0x3a6   : > { %v1149_v17 = vpop.xlane.xlu1 %1148 }
 0x3a7   : > { %2971 = vrsqrt.f32 %v1152_v16  ;;  %v1151_v18 = vmul.f32 0.03125, %v1149_v17 }
 0x3a9   : > { %v1153_v19 = vadd.f32 1e-12, %v1151_v18 }
 0x3ab   : > { %2973 = vrsqrt.f32 %v1153_v19 }
 0x3b1   : > { %v2972_v20 = vpop.eup %2971 }
 0x3b2   : > { %v1156_v22 = vmul.f32 %v2972_v20, %v1140_v6 }
 0x3b4   : > { %v1164_v24 = vmul.f32 %v2580_v21, %v1156_v22 }
 0x3b5   : > { %v2974_v25 = vpop.eup %2973 }
 0x3b6   : > { %v1172_v26 = vadd.f32 %v2581_v23, %v1164_v24  ;;  %v1157_v27 = vmul.f32 %v2974_v25, %v1141_v10 }
 0x3b8   : > { %1174 = vst.msk [vmem:[#allocation2] sm:$0xff] %vm1130_vm0, %v1172_v26  ;;  %v1165_v28 = vmul.f32 %v2580_v21, %v1157_v27 }
 0x3ba   : > { %v1173_v29 = vadd.f32 %v2581_v23, %v1165_v28 }
 0x3bc   : > { %1175 = vst.msk [vmem:[#allocation2 + $0x8] sm:$0xff] %vm1130_vm0, %v1173_v29 }
 0x3bd PF: > { %v2975_v30 = vld [vmem:[%s899_s24] sm:$0xff]   ;;  %v3741_v31 = vmov 0.0   ;;  %v2976_v32 = vld [vmem:[%s899_s24 + $0x8] sm:$0xff]   ;;  %vm3742_vm1 = vmmov 0   ;;  %vm1204_vm2 = vcmask 261120   ;;  %s3743_s24 = smov 96  }
 0x3be   : > { %2668 = vmatprep.subr.bf16.mxu0 %v3741_v31  ;;  %2676 = vmatprep.subr.bf16.mxu1 %v3741_v31  ;;  %v2582_v36 = vld [vmem:[%s907_s9] ss:$0 sm:$0xff]  ;;  %s3744_s29 = smov 64   ;;  %s3745_s9 = smov 80   ;;  %vm1266_vm3 = vcmask 130048   ;;  %vm1388_vm4 = vcmask 1043456  }
 0x3bf   : > { %2669 = vmatpush3.bf16.msra.mxu0 %v2975_v30  ;;  %2672 = vmatprep.mubr.msk.bf16.mxu0 %vm3742_vm1, %v3741_v31  ;;  %v4558_v33 = vld [vmem:[#allocation2] sm:$0xff]  ;;  %s3746_s20 = smov 112   ;;  %v2586_v51 = vld [vmem:[#allocation4] ss:$0 sm:$0xff]  ;;  %vm1362_vm5 = vcmask 64512   ;;  %s3747_s27 = smov 48  }
 0x3c0   : > { %2670 = vmatprep.subr.bf16.mxu0 %v3741_v31  ;;  %2678 = vmatprep.mubr.msk.bf16.mxu1 %vm3742_vm1, %v3741_v31  ;;  %v2587_v56 = vld [vmem:[#allocation4 + $0x1] ss:$0 sm:$0xff]  ;;  %s4899_s3 = scalar_lea.vmem [#allocation13], %s4477_s26  ;;  %s3748_s0 = smov 16   ;;  %vm1943_vm6 = vcmask 523264  }
 0x3c1   : > { %s4900_s22 = smov %s4899_s3  ;;  %s4901_s28 = scalar_lea.vmem [#allocation15], %s4474_s25 }
 0x3c2   : > { %s4902_s23 = scalar_lea.vmem [#allocation19], %s4477_s26  ;;  %s4904_s11 = scalar_lea.vmem [#allocation16], %s4474_s25 }
 0x3c3   : > { %v4560_v34 = vld [vmem:[#allocation2 + $0x8] sm:$0xff]  ;;  %2671 = vmatpush3.bf16.msra.mxu0 %v2976_v32  ;;  %s4903_s4 = smov %s4902_s23  ;;  %s4905_s26 = scalar_lea.vmem [#allocation18], %s4474_s25 }
 0x3c4   : > { %v1178_v35 = vpack.c.bf16 %v4560_v34, %v4558_v33  ;;  %2682 = vmatprep.subr.bf16.mxu0 %v3741_v31  ;;  %s4906_s1 = scalar_lea.vmem [#allocation21], %s4474_s25 }
 0x3c6   : > { %2673 = vmatmul.mubr.msk.bf16.vlgmr.msra.gmra.mrb[0].mxu0 %vm1204_vm2, %v1178_v35 }
 0x3c7   : > { %2684 = vmatprep.mubr.msk.bf16.mxu0 %vm3742_vm1, %v3741_v31 }
 0x499   : > { %v1242_v37 = vpop.f32.mrb[0].mxu0 }
 0x49a   : > { %v1243_v38 = vadd.f32 %v2582_v36, %v1242_v37  ;;  %v2674_v39 = vpop.f32.mrb[1].mxu0 }
 0x49b   : > { %v1245_v40 = vpop.f32.mrb[2].mxu0 }
 0x49c   : > { %v4573_v41 = vpack.c.bf16 %v1243_v38, %v1243_v38  ;;  %v1246_v42 = vadd.f32 %v2582_v36, %v1245_v40  ;;  %v2675_v43 = vpop.f32.mrb[3].mxu0 }
 0x49e   : > { %1264 = vrot.lane.b32.xlu0 %v4573_v41, %s3743_s24  ;;  %v4576_v44 = vpack.c.bf16 %v1246_v42, %v1246_v42 }
 0x4a2   : > { %1314 = vrot.lane.b32.xlu0 %v4576_v44, %s3743_s24  ;;  %s4908_s24 = scalar_lea.vmem [#allocation25], %s4474_s25 }
 0x4a6   : > { %1383 = vrot.lane.b32.xlu0 %v4573_v41, %s3744_s29 }
 0x4aa   : > { %1487 = vrot.lane.b32.xlu0 %v4573_v41, %s3745_s9 }
 0x4ae   : > { %1537 = vrot.lane.b32.xlu0 %v4576_v44, %s3745_s9  ;;  %s4910_s9 = sld [smem:[#allocation53_spill]] }
 0x4b2   : > { %1485 = vrot.lane.b32.xlu0 %v4573_v41, %s3746_s20 }
 0x4b4   : > { %p2614_p4 = scmp.ne.s32.totalorder %s4910_s9, 1 }
 0x4b5   : > { %vm3750_vm7 = vmmov (!%p2614_p4), 0  }
 0x4b6   : > { %1535 = vrot.lane.b32.xlu0 %v4576_v44, %s3746_s20 }
 0x510   : > { %v1265_v45 = vpop.permute.xlu0 %1264 }
 0x511   : > { %v1271_v46 = vsel %vm1266_vm3, %v1265_v45, 0 }
 0x512   : > { %2677 = vmatpush3.bf16.xpose.msra.mxu1 %v1271_v46 }
 0x513   : > { %2688 = vmatprep.subr.bf16.mxu1 %v3741_v31 }
 0x514   : > { %v1315_v47 = vpop.permute.xlu0 %1314 }
 0x515   : > { %v1320_v48 = vsel %vm1266_vm3, %v1315_v47, 0 }
 0x516   : > { %2683 = vmatpush3.bf16.xpose.msra.mxu0 %v1320_v48 }
 0x517   : > { %2694 = vmatprep.subr.bf16.mxu0 %v3741_v31 }
 0x518   : > { %v1384_v49 = vpop.permute.xlu0 %1383 }
 0x519   : > { %v1390_v50 = vsel %vm1388_vm4, %v1384_v49, 0  ;;  %2679 = vmatmul.mubr.msk.bf16.vlgmr.msra.gmra.mrb[0].mxu1 %vm1266_vm3, %v4573_v41 }
 0x51a   : > { %2689 = vmatpush3.bf16.msra.mxu1 %v1390_v50  ;;  %2690 = vmatprep.mubr.msk.bf16.mxu1 %vm3742_vm1, %v3741_v31 }
 0x51b   : > { %2700 = vmatprep.subr.bf16.mxu1 %v3741_v31 }
 0x51c   : > { %v1488_v9 = vpop.permute.xlu0 %1487 }
 0x51d   : > { %2685 = vmatmul.mubr.msk.bf16.vlgmr.msra.gmra.mrb[4].mxu0 %vm1266_vm3, %v4576_v44  ;;  %v1493_v13 = vsel %vm1266_vm3, %v1488_v9, 0 }
 0x51e   : > { %2696 = vmatprep.mubr.msk.bf16.mxu0 %vm3742_vm1, %v3741_v31 }
 0x520   : > { %v1538_v12 = vpop.permute.xlu0 %1537 }
 0x521   : > { %v1543_v16 = vsel %vm1266_vm3, %v1538_v12, 0 }
 0x524   : > { %v1486_v17 = vpop.permute.xlu0 %1485 }
 0x528   : > { %v1536_v18 = vpop.permute.xlu0 %1535 }
 0x5ec   : > { %v1307_v52 = vpop.f32.mrb[0].mxu1 }
 0x5ed   : > { %v1308_v53 = vadd.f32 %v2586_v51, %v1307_v52  ;;  %v2680_v54 = vpop.f32.mrb[1].mxu1 }
 0x5ee   : > { %v1310_v55 = vpop.f32.mrb[2].mxu1 }
 0x5ef   : > { %v2681_v57 = vpop.f32.mrb[3].mxu1  ;;  %v1363_v58 = vsel %vm1362_vm5, %v1308_v53, -inf }
 0x5f0   : > { %1364 = vmax.xlane.f32.xlu1 %v1363_v58  ;;  %v1356_v59 = vpop.f32.mrb[4].mxu0 }
 0x5f1   : > { %v1357_v60 = vadd.f32 %v2587_v56, %v1356_v59  ;;  %v2686_v61 = vpop.f32.mrb[5].mxu0 }
 0x5f2   : > { %v1359_v62 = vpop.f32.mrb[6].mxu0  ;;  %v2978_v61 = vld [vmem:[%s4900_s22 + $0x8] sm:$0xff]  }
 0x5f3   : > { %v2687_v63 = vpop.f32.mrb[7].mxu0  ;;  %v1366_v0 = vsel %vm1362_vm5, %v1357_v60, -inf }
 0x5f4   : > { %1367 = vmax.xlane.f32.xlu1 %v1366_v0 }
 0x605   : > { %1432 = vrot.lane.b32.xlu1 %v4576_v44, %s3744_s29  ;;  %s4909_s29 = scalar_lea.vmem [#allocation27], %s4474_s25 }
 0x67d   : > { %v1365_v1 = vpop.xlane.xlu1 %1364 }
 0x67e   : > { %v1369_v2 = vsub.f32 %v1308_v53, %v1365_v1 }
 0x680   : > { %v1371_v3 = vmul.f32 1.442695, %v1369_v2 }
 0x681   : > { %v1368_v4 = vpop.xlane.xlu1 %1367 }
 0x682   : > { %2985 = vpow2.f32 %v1371_v3  ;;  %v1370_v5 = vsub.f32 %v1357_v60, %v1368_v4  ;;  %v2977_v60 = vld [vmem:[%s4899_s3] sm:$0xff]  }
 0x684   : > { %v1373_v6 = vmul.f32 1.442695, %v1370_v5 }
 0x685   : > { %v1433_v7 = vpop.permute.xlu1 %1432 }
 0x686   : > { %2987 = vpow2.f32 %v1373_v6  ;;  %v1438_v8 = vsel %vm1388_vm4, %v1433_v7, 0 }
 0x687   : > { %2695 = vmatpush3.bf16.msra.mxu0 %v1438_v8 }
 0x688   : > { %2706 = vmatprep.subr.bf16.mxu0 %v3741_v31 }
 0x68c   : > { %v4605_v10 = vpop.eup %2985 }
 0x68d   : > { %v1381_v11 = vpack.c.bf16 %v4605_v10, %v4605_v10  ;;  %v1375_v59 = vsel %vm1362_vm5, %v4605_v10, 0.0 }
 0x68f   : > { %2691 = vmatmul.mubr.msk.bf16.vlgmr.msra.gmra.mrb[4].mxu1 %vm1362_vm5, %v1381_v11 }
 0x690   : > { %v4611_v14 = vpop.eup %2987  ;;  %2701 = vmatpush3.bf16.xpose.msra.mxu1 %v1493_v13  ;;  %2702 = vmatprep.mubr.msk.bf16.mxu1 %vm3742_vm1, %v3741_v31 }
 0x691   : > { %v1382_v15 = vpack.c.bf16 %v4611_v14, %v4611_v14  ;;  %2712 = vmatprep.subr.bf16.mxu1 %v3741_v31 }
 0x693   : > { %2697 = vmatmul.mubr.msk.bf16.vlgmr.msra.gmra.mrb[8].mxu0 %vm1362_vm5, %v1382_v15 }
 0x694   : > { %2707 = vmatpush3.bf16.xpose.msra.mxu0 %v1543_v16  ;;  %2708 = vmatprep.mubr.msk.bf16.mxu0 %vm3742_vm1, %v3741_v31 }
 0x695   : > { %2718 = vmatprep.subr.bf16.mxu0 %v3741_v31 }
 0x697   : > { %2703 = vmatmul.mubr.msk.bf16.vlgmr.msra.gmra.mrb[8].mxu1 %vm1266_vm3, %v1486_v17 }
 0x698   : > { %2714 = vmatprep.mubr.msk.bf16.mxu1 %vm3742_vm1, %v3741_v31 }
 0x69b   : > { %2709 = vmatmul.mubr.msk.bf16.vlgmr.msra.gmra.mrb[12].mxu0 %vm1266_vm3, %v1536_v18 }
 0x69c   : > { %2720 = vmatprep.mubr.msk.bf16.mxu0 %vm3742_vm1, %v3741_v31 }
 0x762   : > { %v4629_v19 = vpop.f32.mrb[4].mxu1 }
 0x763   : > { %v2692_v20 = vpop.f32.mrb[5].mxu1 }
 0x764   : > { %v1429_v21 = vpop.f32.mrb[6].mxu1 }
 0x765   : > { %v2693_v22 = vpop.f32.mrb[7].mxu1 }
 0x766   : > { %v4631_v23 = vpop.f32.mrb[8].mxu0  ;;  %v2596_v22 = vld [vmem:[%s4901_s28] ss:$0 sm:$0xff] }
 0x767   : > { %v2698_v24 = vpop.f32.mrb[9].mxu0 }
 0x768   : > { %v1477_v25 = vpop.f32.mrb[10].mxu0 }
 0x769   : > { %v2699_v26 = vpop.f32.mrb[11].mxu0 }
 0x76a   : > { %v1529_v27 = vpop.f32.mrb[8].mxu1 }
 0x76b   : > { %v1530_v28 = vadd.f32 %v2586_v51, %v1529_v27  ;;  %v2704_v29 = vpop.f32.mrb[9].mxu1 }
 0x76c   : > { %v1532_v30 = vpop.f32.mrb[10].mxu1 }
 0x76d   : > { %v2705_v32 = vpop.f32.mrb[11].mxu1  ;;  %v1585_v35 = vsel %vm1362_vm5, %v1530_v28, -inf }
 0x76e   : > { %1586 = vmax.xlane.f32.xlu1 %v1585_v35  ;;  %v1579_v36 = vpop.f32.mrb[12].mxu0 }
 0x76f   : > { %v1580_v37 = vadd.f32 %v2587_v56, %v1579_v36  ;;  %v2710_v38 = vpop.f32.mrb[13].mxu0  ;;  %v1378_v56 = vsel %vm1362_vm5, %v4611_v14, 0.0 }
 0x770   : > { %v1582_v39 = vpop.f32.mrb[14].mxu0 }
 0x771   : > { %v2711_v40 = vpop.f32.mrb[15].mxu0  ;;  %v1588_v42 = vsel %vm1362_vm5, %v1580_v37, -inf }
 0x772   : > { %1589 = vmax.xlane.f32.xlu0 %v1588_v42 }
 0x77f   : > { %1653 = vrot.lane.b32.xlu1 %v4576_v44, %s3747_s27 }
 0x788   : > { %1605 = vrot.lane.b32.xlu0 %v4573_v41, %s3747_s27 }
 0x7fb   : > { %v1587_v43 = vpop.xlane.xlu1 %1586 }
 0x7fc   : > { %v1591_v45 = vsub.f32 %v1530_v28, %v1587_v43 }
 0x7fe   : > { %v1593_v46 = vmul.f32 1.442695, %v1591_v45 }
 0x7ff   : > { %v1654_v47 = vpop.permute.xlu1 %1653  ;;  %v1590_v48 = vpop.xlane.xlu0 %1589 }
 0x800   : > { %2989 = vpow2.f32 %v1593_v46  ;;  %v1659_v49 = vsel %vm1388_vm4, %v1654_v47, 0  ;;  %v1592_v50 = vsub.f32 %v1580_v37, %v1590_v48  ;;  %v2980_v47 = vld [vmem:[%s4903_s4 + $0x8] sm:$0xff]  }
 0x801   : > { %2719 = vmatpush3.bf16.msra.mxu0 %v1659_v49 }
 0x802   : > { %v1595_v51 = vmul.f32 1.442695, %v1592_v50  ;;  %2732 = vmatprep.subr.bf16.mxu0 %v3741_v31 }
 0x803   : > { %v1606_v52 = vpop.permute.xlu0 %1605 }
 0x804   : > { %2991 = vpow2.f32 %v1595_v51  ;;  %v1611_v53 = vsel %vm1388_vm4, %v1606_v52, 0 }
 0x805   : > { %2713 = vmatpush3.bf16.msra.mxu1 %v1611_v53 }
 0x806   : > { %2724 = vmatprep.subr.bf16.mxu1 %v3741_v31 }
 0x80a   : > { %v2990_v41 = vpop.eup %2989 }
 0x80b   : > { %v1597_v44 = vsel %vm1362_vm5, %v2990_v41, 0.0  ;;  %v1603_v54 = vpack.c.bf16 %v2990_v41, %v2990_v41 }
 0x80c   : > { %1598 = vadd.xlane.f32.xlu1 %v1597_v44 }
 0x80d   : > { %2715 = vmatmul.mubr.msk.bf16.vlgmr.msra.gmra.mrb[12].mxu1 %vm1362_vm5, %v1603_v54  ;;  %v2600_v54 = vld [vmem:[%s4904_s11] ss:$0 sm:$0xff] }
 0x80e   : > { %v2992_v55 = vpop.eup %2991  ;;  %2728 = vmatprep.mubr.msk.bf16.mxu1 %vm3742_vm1, %v3741_v31  ;;  %2725 = vmatpush3.bf16.msra.mxu1 %v2977_v60 }
 0x80f   : > { %v1600_v57 = vsel %vm1362_vm5, %v2992_v55, 0.0  ;;  %v1604_v58 = vpack.c.bf16 %v2992_v55, %v2992_v55  ;;  %2726 = vmatprep.subr.bf16.mxu1 %v3741_v31 }
 0x810   : > { %1379 = vadd.xlane.f32.xlu1 %v1378_v56  ;;  %1601 = vadd.xlane.f32.xlu0 %v1600_v57 }
 0x811   : > { %2721 = vmatmul.mubr.msk.bf16.vlgmr.msra.gmra.mrb[16].mxu0 %vm1362_vm5, %v1604_v58  ;;  %v2601_v58 = vld [vmem:[%s4905_s26] ss:$0 sm:$0xff] }
 0x812   : > { %2736 = vmatprep.mubr.msk.bf16.mxu0 %vm3742_vm1, %v3741_v31  ;;  %2727 = vmatpush3.bf16.msra.mxu1 %v2978_v61 }
 0x813   : > { %2740 = vmatprep.subr.bf16.mxu1 %v3741_v31 }
 0x814   : > { %1376 = vadd.xlane.f32.xlu0 %v1375_v59 }
 0x899   : > { %v1599_v62 = vpop.xlane.xlu1 %1598 }
 0x89d   : > { %v1380_v63 = vpop.xlane.xlu1 %1379  ;;  %v1602_v0 = vpop.xlane.xlu0 %1601 }
 0x89e   : > { %2993 = vrcp.f32 %v1380_v63  ;;  %v2981_v63 = vld [vmem:[%s4509_s13] sm:$0xff]  }
 0x8a1   : > { %v1377_v1 = vpop.xlane.xlu0 %1376 }
 0x8a2   : > { %2995 = vrcp.f32 %v1377_v1  ;;  %v2983_v1 = vld [vmem:[%s4509_s13 + $0x10] sm:$0xff]  }
 0x8a3   : > { %2997 = vrcp.f32 %v1599_v62 }
 0x8a4   : > { %2999 = vrcp.f32 %v1602_v0  ;;  %v2982_v0 = vld [vmem:[%s4509_s13 + $0x8] sm:$0xff]  }
 0x8a8   : > { %v2994_v2 = vpop.eup %2993 }
 0x8a9   : > { %v1483_v5 = vmul.f32 %v2994_v2, %v4631_v23  ;;  %v2984_v2 = vld [vmem:[%s4509_s13 + $0x18] sm:$0xff]   ;;  %s4907_s13 = scalar_lea.vmem [#allocation24], %s4474_s25 }
 0x8ac   : > { %v2996_v3 = vpop.eup %2995 }
 0x8ad   : > { %v1482_v4 = vmul.f32 %v2996_v3, %v4629_v19  ;;  %v2998_v10 = vpop.eup %2997  ;;  %v2602_v3 = vld [vmem:[%s4906_s1] ss:$0 sm:$0xff] }
 0x8ae   : > { %v3000_v12 = vpop.eup %2999 }
 0x8af   : > { %v1484_v6 = vpack.c.bf16 %v1483_v5, %v1482_v4 }
 0x8e0   : > { %v1647_v7 = vpop.f32.mrb[12].mxu1 }
 0x8e1   : > { %v2716_v8 = vpop.f32.mrb[13].mxu1  ;;  %v1703_v14 = vmul.f32 %v2998_v10, %v1647_v7 }
 0x8e2   : > { %v1650_v9 = vpop.f32.mrb[14].mxu1 }
 0x8e3   : > { %v2717_v11 = vpop.f32.mrb[15].mxu1 }
 0x8e4   : > { %v1695_v13 = vpop.f32.mrb[16].mxu0 }
 0x8e5   : > { %v1704_v15 = vmul.f32 %v3000_v12, %v1695_v13  ;;  %v2722_v16 = vpop.f32.mrb[17].mxu0 }
 0x8e6   : > { %v1698_v17 = vpop.f32.mrb[18].mxu0 }
 0x8e7   : > { %v1705_v18 = vpack.c.bf16 %v1704_v15, %v1703_v14  ;;  %v2723_v20 = vpop.f32.mrb[19].mxu0 }
 0x8e9   : > { %1707 = vrot.lane.b32.xlu0 %v1705_v18, %s3748_s0 }
 0x95b   : > { %v1708_v19 = vpop.permute.xlu0 %1707 }
 0x95c   : > { %v1711_v21 = vsel %vm1266_vm3, %v1484_v6, %v1708_v19  ;;  %v2606_v19 = vld [vmem:[%s4907_s13] ss:$0 sm:$0xff] }
 0x95d   : > { %2729 = vmatmul.mubr.msk.bf16.vlgmr.msra.gmra.mrb[16].mxu1 %vm1204_vm2, %v1711_v21 }
 0x95e   : > { %2748 = vmatprep.mubr.msk.bf16.mxu1 %vm3742_vm1, %v3741_v31  ;;  %2741 = vmatpush3.bf16.msra.mxu1 %v2981_v63  ;;  %v3015_v63 = vld [vmem:[#allocation31] sm:$0xff] (!%p2614_p4)  }
 0x95f   : > { %2742 = vmatprep.subr.bf16.mxu1 %v3741_v31 }
 0x962   : > { %2743 = vmatpush3.bf16.msra.mxu1 %v2982_v0  ;;  %v3016_v0 = vld [vmem:[#allocation31 + $0x8] sm:$0xff] (!%p2614_p4)  }
 0x963   : > { %2744 = vmatprep.subr.bf16.mxu1 %v3741_v31 }
 0x966   : > { %2745 = vmatpush3.bf16.msra.mxu1 %v2983_v1  ;;  %v2615_v1 = vld [vmem:[#allocation30] ss:$0 sm:$0xff] (!%p2614_p4) }
 0x967   : > { %2746 = vmatprep.subr.bf16.mxu1 %v3741_v31 }
 0x96a   : > { %2747 = vmatpush3.bf16.msra.mxu1 %v2984_v2 }
 0xa30   : > { %v1771_v23 = vpop.f32.mrb[16].mxu1 }
 0xa31   : > { %v1772_v24 = vadd.f32 %v2596_v22, %v1771_v23  ;;  %v2730_v25 = vpop.f32.mrb[17].mxu1 }
 0xa32   : > { %v1774_v26 = vpop.f32.mrb[18].mxu1 }
 0xa33   : > { %v1775_v27 = vadd.f32 %v2596_v22, %v1774_v26  ;;  %v2731_v28 = vpop.f32.mrb[19].mxu1  ;;  %v1778_v29 = vadd.f32 %v1772_v24, %v4558_v33 }
 0xa35   : > { %v1782_v30 = vsel %vm1204_vm2, %v1778_v29, 0.0  ;;  %v1779_v32 = vadd.f32 %v1775_v27, %v4560_v34  ;;  %v2979_v34 = vld [vmem:[%s4902_s23] sm:$0xff]  }
 0xa36   : > { %1783 = vadd.xlane.f32.xlu1 %v1782_v30  ;;  %2733 = vmatpush3.bf16.msra.mxu0 %v2979_v34 }
 0xa37   : > { %v1785_v35 = vsel %vm1204_vm2, %v1779_v32, 0.0  ;;  %2734 = vmatprep.subr.bf16.mxu0 %v3741_v31 }
 0xa3a   : > { %1786 = vadd.xlane.f32.xlu1 %v1785_v35  ;;  %2735 = vmatpush3.bf16.msra.mxu0 %v2980_v47 }
 0xac3   : > { %v1784_v36 = vpop.xlane.xlu1 %1783 }
 0xac4   : > { %v1789_v37 = vmul.f32 0.03125, %v1784_v36 }
 0xac6   : > { %v1791_v38 = vsub.f32 %v1778_v29, %v1789_v37 }
 0xac7   : > { %v1787_v39 = vpop.xlane.xlu1 %1786 }
 0xac8   : > { %v1790_v40 = vmul.f32 0.03125, %v1787_v39  ;;  %v1793_v42 = vmul.f32 %v1791_v38, %v1791_v38 }
 0xaca   : > { %v1792_v43 = vsub.f32 %v1779_v32, %v1790_v40  ;;  %v1795_v45 = vsel %vm1204_vm2, %v1793_v42, 0.0 }
 0xacb   : > { %1796 = vadd.xlane.f32.xlu1 %v1795_v45 }
 0xacc   : > { %v1794_v33 = vmul.f32 %v1792_v43, %v1792_v43 }
 0xace   : > { %v1798_v46 = vsel %vm1204_vm2, %v1794_v33, 0.0 }
 0xacf   : > { %1799 = vadd.xlane.f32.xlu1 %v1798_v46 }
 0xb58   : > { %v1797_v48 = vpop.xlane.xlu1 %1796 }
 0xb59   : > { %v1801_v49 = vmul.f32 0.03125, %v1797_v48 }
 0xb5b   : > { %v1803_v50 = vadd.f32 1e-12, %v1801_v49 }
 0xb5c   : > { %v1800_v51 = vpop.xlane.xlu1 %1799 }
 0xb5d   : > { %3001 = vrsqrt.f32 %v1803_v50  ;;  %v1802_v52 = vmul.f32 0.03125, %v1800_v51  ;;  %v2612_v51 = vld [vmem:[%s4908_s24] ss:$0 sm:$0xff] }
 0xb5f   : > { %v1804_v53 = vadd.f32 1e-12, %v1802_v52 }
 0xb61   : > { %3003 = vrsqrt.f32 %v1804_v53  ;;  %v2613_v53 = vld [vmem:[%s4909_s29] ss:$0 sm:$0xff] }
 0xb67   : > { %v3002_v41 = vpop.eup %3001 }
 0xb68   : > { %v1807_v44 = vmul.f32 %v3002_v41, %v1791_v38 }
 0xb6a   : > { %v1815_v56 = vmul.f32 %v2600_v54, %v1807_v44 }
 0xb6b   : > { %v3004_v55 = vpop.eup %3003 }
 0xb6c   : > { %v1808_v57 = vmul.f32 %v3004_v55, %v1792_v43  ;;  %v1823_v60 = vadd.f32 %v2601_v58, %v1815_v56 }
 0xb6e   : > { %v1816_v59 = vmul.f32 %v2600_v54, %v1808_v57 }
 0xb70   : > { %v1824_v61 = vadd.f32 %v2601_v58, %v1816_v59  ;;  %v3013_v58 = vld [vmem:[#allocation28] sm:$0xff] (!%p2614_p4)   ;;  %v3749_v59 = vmov (!%p2614_p4), 0.0  }
 0xb71   : > { %2752 = vmatprep.subr.bf16.mxu0 (!%p2614_p4), %v3749_v59  ;;  %2760 = vmatprep.subr.bf16.mxu1 (!%p2614_p4), %v3749_v59 }
 0xb72   : > { %v1825_v62 = vpack.c.bf16 %v1824_v61, %v1823_v60 }
 0xb74   : > { %2737 = vmatmul.mubr.msk.bf16.vlgmr.msra.gmra.mrb[20].mxu0 %vm1204_vm2, %v1825_v62 }
 0xb75   : > { %2753 = vmatpush3.bf16.msra.mxu0 (!%p2614_p4), %v3013_v58  ;;  %2756 = vmatprep.mubr.msk.bf16.mxu0 (!%p2614_p4), %vm3750_vm7, %v3749_v59 }
 0xb76   : > { %2754 = vmatprep.subr.bf16.mxu0 (!%p2614_p4), %v3749_v59 }
 0xc47   : > { %v1886_v4 = vpop.f32.mrb[20].mxu0 }
 0xc48   : > { %v1887_v5 = vadd.f32 %v2602_v3, %v1886_v4  ;;  %v2738_v6 = vpop.f32.mrb[21].mxu0 }
 0xc49   : > { %v1889_v7 = vpop.f32.mrb[22].mxu0 }
 0xc4a   : > { %v1895_v8 = vmul.f32 0.70710677, %v1887_v5  ;;  %v1890_v9 = vadd.f32 %v2602_v3, %v1889_v7  ;;  %v2739_v10 = vpop.f32.mrb[23].mxu0  ;;  %v1893_v15 = vmul.f32 0.5, %v1887_v5 }
 0xc4c   : > { %3005 = verf.f32 %v1895_v8  ;;  %v1896_v11 = vmul.f32 0.70710677, %v1890_v9  ;;  %v1894_v31 = vmul.f32 0.5, %v1890_v9  ;;  %v2619_v9 = vld [vmem:[#allocation33] ss:$0 sm:$0xff] (!%p2614_p4) }
 0xc4e   : > { %3007 = verf.f32 %v1896_v11 }
 0xc56   : > { %v3006_v12 = vpop.eup %3005 }
 0xc57   : > { %v1899_v13 = vadd.f32 1.0, %v3006_v12 }
 0xc58   : > { %v3008_v14 = vpop.eup %3007 }
 0xc59   : > { %v1900_v16 = vadd.f32 1.0, %v3008_v14  ;;  %v1901_v17 = vmul.f32 %v1899_v13, %v1893_v15 }
 0xc5b   : > { %v1902_v18 = vmul.f32 %v1900_v16, %v1894_v31 }
 0xc5d   : > { %v1903_v20 = vpack.c.bf16 %v1902_v18, %v1901_v17 }
 0xc5f   : > { %2749 = vmatmul.mubr.msk.bf16.vlgmr.msra.gmra.mrb[20].mxu1 %vm1943_vm6, %v1903_v20 }
 0xc60   : > { %2764 = vmatprep.mubr.msk.bf16.mxu1 (!%p2614_p4), %vm3750_vm7, %v3749_v59  ;;  %2761 = vmatpush3.bf16.msra.mxu1 (!%p2614_p4), %v3015_v63 }
 0xc61   : > { %2762 = vmatprep.subr.bf16.mxu1 (!%p2614_p4), %v3749_v59 }
 0xc64   : > { %2763 = vmatpush3.bf16.msra.mxu1 (!%p2614_p4), %v3016_v0 }
 0xd32   : > { %v1981_v21 = vpop.f32.mrb[20].mxu1 }
 0xd33   : > { %v1982_v22 = vadd.f32 %v2606_v19, %v1981_v21  ;;  %v2750_v23 = vpop.f32.mrb[21].mxu1 }
 0xd34   : > { %v1984_v24 = vpop.f32.mrb[22].mxu1 }
 0xd35   : > { %v1985_v25 = vadd.f32 %v2606_v19, %v1984_v24  ;;  %v2751_v26 = vpop.f32.mrb[23].mxu1  ;;  %v1988_v27 = vadd.f32 %v1982_v22, %v1823_v60  ;;  %v3014_v60 = vld [vmem:[#allocation28 + $0x8] sm:$0xff] (!%p2614_p4)  }
 0xd36   : > { %2755 = vmatpush3.bf16.msra.mxu0 (!%p2614_p4), %v3014_v60 }
 0xd37   : > { %v1992_v28 = vsel %vm1204_vm2, %v1988_v27, 0.0  ;;  %v1989_v29 = vadd.f32 %v1985_v25, %v1824_v61 }
 0xd38   : > { %1993 = vadd.xlane.f32.xlu1 %v1992_v28 }
 0xd39   : > { %v1995_v30 = vsel %vm1204_vm2, %v1989_v29, 0.0 }
 0xd3a   : > { %1996 = vadd.xlane.f32.xlu0 %v1995_v30 }
 0xdc5   : > { %v1994_v32 = vpop.xlane.xlu1 %1993 }
 0xdc6   : > { %v1998_v35 = vmul.f32 0.03125, %v1994_v32 }
 0xdc7   : > { %v1997_v36 = vpop.xlane.xlu0 %1996 }
 0xdc8   : > { %v2000_v37 = vsub.f32 %v1988_v27, %v1998_v35  ;;  %v1999_v38 = vmul.f32 0.03125, %v1997_v36 }
 0xdca   : > { %v2001_v39 = vsub.f32 %v1989_v29, %v1999_v38  ;;  %v2002_v40 = vmul.f32 %v2000_v37, %v2000_v37 }
 0xdcc   : > { %v2004_v42 = vsel %vm1204_vm2, %v2002_v40, 0.0  ;;  %v2003_v43 = vmul.f32 %v2001_v39, %v2001_v39 }
 0xdcd   : > { %2005 = vadd.xlane.f32.xlu1 %v2004_v42 }
 0xdce   : > { %v2007_v45 = vsel %vm1204_vm2, %v2003_v43, 0.0 }
 0xdd1   : > { %2008 = vadd.xlane.f32.xlu1 %v2007_v45 }
 0xe5a   : > { %v2006_v33 = vpop.xlane.xlu1 %2005 }
 0xe5b   : > { %v2010_v46 = vmul.f32 0.03125, %v2006_v33 }
 0xe5d   : > { %v2012_v34 = vadd.f32 1e-12, %v2010_v46 }
 0xe5e   : > { %v2009_v47 = vpop.xlane.xlu1 %2008 }
 0xe5f   : > { %3009 = vrsqrt.f32 %v2012_v34  ;;  %v2011_v48 = vmul.f32 0.03125, %v2009_v47 }
 0xe61   : > { %v2013_v49 = vadd.f32 1e-12, %v2011_v48 }
 0xe63   : > { %3011 = vrsqrt.f32 %v2013_v49 }
 0xe69   : > { %v3010_v50 = vpop.eup %3009 }
 0xe6a   : > { %v2016_v52 = vmul.f32 %v3010_v50, %v2000_v37 }
 0xe6c   : > { %v2024_v41 = vmul.f32 %v2612_v51, %v2016_v52 }
 0xe6d   : > { %v3012_v44 = vpop.eup %3011 }
 0xe6e   : > { %v2032_v54 = vadd.f32 %v2613_v53, %v2024_v41  ;;  %v2017_v55 = vmul.f32 %v3012_v44, %v2001_v39  ;;  %2039 = sbr.rel (%p2614_p4) target bundleno = 4152 (0x1038), region = 184 }
 0xe70   : > { %2034 = vst.msk [vmem:[#allocation2] sm:$0xff] %vm1204_vm2, %v2032_v54  ;;  %v2025_v56 = vmul.f32 %v2612_v51, %v2017_v55 }
 0xe72   : > { %v2033_v57 = vadd.f32 %v2613_v53, %v2025_v56 }
 0xe74   : > { %2035 = vst.msk [vmem:[#allocation2 + $0x8] sm:$0xff] %vm1204_vm2, %v2033_v57 }
 0xe7b   : > { %v2040_v61 = vld [vmem:[#allocation2] ss:$8 sm:$0x3] }
 0xe7c   : > { %v2041_v62 = vpack.c.bf16 %v2040_v61, %v2040_v61 }
 0xe7e   : > { %2757 = vmatmul.mubr.msk.bf16.vlgmr.msra.gmra.mrb[0].mxu0 %vm1204_vm2, %v2041_v62 }
 0xf51   : > { %v2102_v2 = vpop.f32.mrb[0].mxu0 }
 0xf52   : > { %v2103_v3 = vadd.f32 %v2615_v1, %v2102_v2  ;;  %v2758_v4 = vpop.f32.mrb[1].mxu0 }
 0xf53   : > { %v2105_v5 = vpop.f32.mrb[2].mxu0 }
 0xf54   : > { %3017 = vtanh.f32 %v2103_v3  ;;  %v2759_v6 = vpop.f32.mrb[3].mxu0 }
 0xf5e   : > { %v3018_v7 = vpop.eup %3017 }
 0xf5f   : > { %v2109_v8 = vpack.c.bf16 %v3018_v7, %v3018_v7 }
 0xf61   : > { %2765 = vmatmul.mubr.msk.bf16.vlgmr.msra.gmra.mrb[0].mxu1 %vm1204_vm2, %v2109_v8 }
0x1034   : > { %v2170_v10 = vpop.f32.mrb[0].mxu1 }
0x1035   : > { %v2171_v11 = vadd.f32 %v2619_v9, %v2170_v10  ;;  %v2766_v12 = vpop.f32.mrb[1].mxu1 }
0x1036   : > { %v2173_v13 = vpop.f32.mrb[2].mxu1 }
0x1037   : > { %2176 = vst [vmem:[#allocation34] sm:$0x3] %v2171_v11  ;;  %v2767_v14 = vpop.f32.mrb[3].mxu1 }
0x1038 PF: > { %s4911_s25 = sld [smem:[#allocation55_spill]]  ;;  %s3751_s20 = smov [#allocation34]  }
0x1039   : > { %s2186_s27 = sshll.u32 %s3751_s20, 4  ;;  %s2187_s27 = int_to_ptr.vmem [resolvable:$true] %s2186_s27 }
0x103a   : > { %s3597_s3 = scalar_lea.vmem %s2187_s27, 32  ;;  %p3604_p13 = scmp.lt.s32.totalorder %s2187_s27, %s2187_s27 }
0x103b   : > { %p3598_p9 = scmp.ne.s32.totalorder %s2187_s27, %s3597_s3  ;;  %p3605_p0 = scmp.lt.s32.totalorder %s3597_s3, %s3597_s3 }
0x103d   : > { %p3606_p7 = por %p3605_p0, %p3604_p13 }
0x103e   : > { %p2898_p5 = scmp.eq.s32.totalorder %s4911_s25, 1 }
0x1040   : > { %p3599_p11 = pnand %p3598_p9, %p2898_p5 }
0x1042   : > { %p3600_p2 = pneg %p3599_p11 }
0x1044   : > { %p3607_p8 = pnand %p3606_p7, %p3600_p2 }
0x1046   : > { %3610 = shalt.err (!%p3607_p8)
}
0x1047   : > { %s4912_s28 = sld [smem:[#allocation76_spill]] }
0x104d   : > { %s3611_s23 = scalar_lea.hbm %s4912_s28, 32 }
0x104e   : > { %p3612_p1 = scmp.ne.s32.totalorder %s4912_s28, %s3611_s23  ;;  %p3617_p10 = scmp.lt.u32.totalorder %s3611_s23, %s4912_s28 }
0x1050   : > { %p3613_p12 = pnand %p3612_p1, %p2898_p5 }
0x1052   : > { %p3614_p3 = pneg %p3613_p12 }
0x1054   : > { %p3619_p6 = pnand %p3617_p10, %p3614_p3 }
0x1056   : > { %3622 = shalt.err (!%p3619_p6)
}
0x1057   : > { %2821 = dma.vmem_to_hbm [thread:$0]  (%p2898_p5), %s2187_s27, 32, %s4912_s28, [#allocation6]  }
0x1058   : > { %3690 = dma.done.wait (%p2898_p5), [#allocation6], 32  }
0x1059   : > { %3692 = vsyncadd (%p2898_p5), [#allocation6], 4294967264 }
0x105a PF: > { %s4913_s29 = sld [smem:[#allocation54_spill]]  ;;  %s4914_s1 = sld [smem:[#allocation51_spill]] }
0x105b   : > { %s4915_s22 = sld [smem:[#allocation52_spill]]  ;;  %s4916_s23 = sld [smem:[#allocation59_spill]] }
0x105c   : > { %s4917_s9 = sld [smem:[#allocation58_spill]]  ;;  %s4918_s24 = smov %s3711_s2 }
0x1060   : > { %s53_s25 = sadd.s32 1, %s4913_s29  }
0x1061   : > { %p50_p4 = scmp.ge.s32.totalorder %s53_s25, 4  }
0x1062   : > { %s4919_s2 = smov %s4917_s9 }
0x1063   :  { %52 = sbr.rel (!%p50_p4) target bundleno = 37 (0x25), region = 308 }
0x106a   :  { %2199 = vsyncpa [#allocation5], 1 }
0x106b   :  { %2201 = vsyncpa [#allocation5 + $0x1], 1 }
0x106c   :  { %2202 = vsyncpa [#allocation8], 1 }
0x106d   :  { %2203 = vsyncpa [#allocation11], 1 }
0x106e   :  { %2205 = vsyncpa [#allocation11 + $0x1], 1 }
0x106f   :  { %2206 = vsyncpa [#allocation14], 1 }
0x1070   :  { %2208 = vsyncpa [#allocation14 + $0x1], 1 }
0x1071   :  { %2209 = vsyncpa [#allocation17], 1 }
0x1072   :  { %2211 = vsyncpa [#allocation17 + $0x1], 1 }
0x1073   :  { %2212 = vsyncpa [#allocation20], 1 }
0x1074   :  { %2214 = vsyncpa [#allocation20 + $0x1], 1 }
0x1075   :  { %2215 = vsyncpa [#allocation23], 1 }
0x1076   :  { %2217 = vsyncpa [#allocation23 + $0x1], 1 }
0x1077   :  { %2218 = vsyncpa [#allocation26], 1 }
0x1078   :  { %2220 = vsyncpa [#allocation26 + $0x1], 1 }
0x1079   :  { %2221 = vsyncpa [#allocation29], 1 }
0x107a   :  { %2222 = vsyncpa [#allocation32], 1 }
0x107b   :  { %2223 = vsyncpa [#allocation6], 1 }
0x107c   :  { %2225 = vsyncpa [#allocation6 + $0x1], 1 }
0x107d   :  { %2226 = vsyncmov [#allocation3] }
0x1080   :  { %s2227_s10 = vpop.sfrf %2226 }
0x1081   :  { %p2627_p5 = scmp.ne.s32.totalorder %s2227_s10, 0 }
0x1083   :  { %2231 = shalt.err (%p2627_p5)  }

</bundles_post_ra>
